<compile_context>
chip_gen: v5e
topology: v5e:2x2
jax: 0.10.0
libtpu: 0.0.40
codegen_flags: <defaults>
</compile_context>

<pallas_src>
import functools
import math

import jax
import jax.numpy as jnp
from jax.experimental import pallas as pl
from jax.experimental.pallas import tpu as pltpu

_LOG_2PI = 1.8378770664093453                 # log(2*pi)
_PRIOR_SIGMA = math.log1p(math.exp(1.0))      # softplus(1.0): prior is N(0, softplus(1)) elementwise


# ---------------------------------------------------------------------------
# Generation-aware configuration (safe fallback on CPU / interpret mode).
# ---------------------------------------------------------------------------
def _device_kind():
    try:
        d = jax.devices()[0]
        if d.platform == "tpu":
            return d.device_kind.lower()
    except Exception:
        pass
    return ""


_TPU_KIND = _device_kind()
_IS_V7 = ("v7" in _TPU_KIND) or ("7x" in _TPU_KIND)
# bf16 VPU/EUP only exists on v6e/v7x; keep f32 elementwise on v5e and older (and on CPU).
_BF16_ELEMENTWISE = any(t in _TPU_KIND for t in ("v6", "6e", "v7", "7x"))
# v7x has only 64 MiB physical VMEM per TensorCore -> smaller scoped limit & tile budget there.
_VMEM_LIMIT_BYTES = (32 if _IS_V7 else 64) * 1024 * 1024
_TILE_BUDGET_ELEMS = (256 * 1024) if _IS_V7 else (1024 * 1024)   # f32 elems per weight-sized tile


def _softplus(x):
    # numerically safe softplus (log1p(exp(x)) overflows for x > ~88 in f32)
    return jnp.maximum(x, 0.0) + jnp.log1p(jnp.exp(-jnp.abs(x)))


# ---------------------------------------------------------------------------
# Kernel
# ---------------------------------------------------------------------------
def _bayes_linear_kernel(
    x_ref, mu_w_ref, rho_w_ref, mu_b_ref, rho_b_ref, eps_w_ref, eps_b_ref,   # inputs (VMEM)
    out_ref, kl_ref, *wb_refs,                                               # outputs (VMEM)
    apply_relu: bool, inv_temperature: float, bf16_elementwise: bool, emit_weights: bool,
):
    f32 = jnp.float32
    cdt = jnp.bfloat16 if bf16_elementwise else f32   # compute dtype for the EUP-heavy path

    mu_w = mu_w_ref[...]          # (in_f, t_out) f32
    rho_w = rho_w_ref[...]
    mu_b = mu_b_ref[...]          # (1, t_out)  f32
    rho_b = rho_b_ref[...]
    eps_w = eps_w_ref[...]        # (in_f, t_out) f32
    eps_b = eps_b_ref[...]

    # --- transcendental-heavy path (softplus, log) runs in cdt; reductions stay f32 ---
    sigma_w_c = _softplus(rho_w.astype(cdt))
    sigma_b_c = _softplus(rho_b.astype(cdt))
    log_sigma_w = jnp.log(sigma_w_c).astype(f32)
    log_sigma_b = jnp.log(sigma_b_c).astype(f32)
    sigma_w = sigma_w_c.astype(f32)
    sigma_b = sigma_b_c.astype(f32)

    # reparameterization sample (f32)
    weight = mu_w + sigma_w * eps_w            # (in_f, t_out)
    bias = mu_b + sigma_b * eps_b              # (1,  t_out)

    in_f = mu_w.shape[0]
    n_col = in_f + 1   # weight elements + 1 bias element per output feature

    # --- log posterior per output column ---
    # (w - mu)/sigma == eps exactly, and the -0.5*log(2*pi) constant is folded out of the
    # per-element sum:  post = -n/2*log(2*pi) - sum(log sigma) - 0.5*sum(eps^2)
    log_sigma_sum = jnp.sum(log_sigma_w, axis=0, keepdims=True) + log_sigma_b    # (1, t_out)
    eps_sq_sum = jnp.sum(eps_w * eps_w, axis=0, keepdims=True) + eps_b * eps_b   # (1, t_out)
    log_posterior_col = (-0.5 * _LOG_2PI) * n_col - log_sigma_sum - 0.5 * eps_sq_sum

    # --- log prior per output column: N(0, softplus(1)) elementwise, constants folded ---
    prior_const = n_col * (-0.5 * _LOG_2PI - math.log(_PRIOR_SIGMA))
    inv_2var = 0.5 / (_PRIOR_SIGMA * _PRIOR_SIGMA)
    sq_sum = jnp.sum(weight * weight, axis=0, keepdims=True) + bias * bias
    log_prior_col = prior_const - inv_2var * sq_sum

    # NOTE: temperature scales only the posterior term (posterior has Temperature=T, prior T=1),
    # matching the torch construction; default T=1 makes this exact either way.
    kl_ref[...] = (inv_temperature * log_posterior_col - log_prior_col).astype(kl_ref.dtype)

    # --- hot path: bf16 MXU matmul with f32 accumulation, fused bias (+ReLU) ---
    w_bf16 = weight.astype(jnp.bfloat16)
    acc = jnp.dot(x_ref[...], w_bf16, preferred_element_type=jnp.float32)   # x is already bf16
    acc = acc + bias
    if apply_relu:
        acc = jnp.maximum(acc, 0.0)
    out_ref[...] = acc.astype(out_ref.dtype)

    if emit_weights:
        w_ref, b_ref = wb_refs
        w_ref[...] = w_bf16                       # bf16 writeback: halves the weight HBM write
        b_ref[...] = bias.astype(b_ref.dtype)


# ---------------------------------------------------------------------------
# Wrapper
# ---------------------------------------------------------------------------
def _pick_out_tile(out_f, in_f, budget_elems):
    """Largest out_features tile (multiple of 128) whose f32 weight block fits the budget."""
    if out_f <= 128 or in_f * out_f <= budget_elems:
        return out_f
    for t in (2048, 1024, 512, 256, 128):
        if out_f % t == 0 and in_f * t <= budget_elems:
            return t
    return out_f  # non-128-multiple out_f: fall back to the whole layer (layout-legal)


def bayes_linear_layer(x, mu_w, rho_w, mu_b, rho_b, eps_w, eps_b, *,
                       apply_relu, temperature=1.0, return_weights=True,
                       out_dtype=jnp.float32):
    """One Bayesian linear layer. Weights are stored in (in_features, out_features) layout so
    the matmul is x @ W with a lane-dense output (no in-kernel transpose)."""
    if x.dtype != jnp.bfloat16:
        x = x.astype(jnp.bfloat16)   # MXU consumes bf16 anyway; halves the x HBM read
    batch, in_f = x.shape
    assert mu_w.shape[0] == in_f
    out_f = mu_w.shape[1]
    t_out = _pick_out_tile(out_f, in_f, _TILE_BUDGET_ELEMS)
    grid = (out_f // t_out,)
    # TODO(synk): add a "parallel" batch axis and an "arbitrary" in_features axis with a VMEM
    # f32 accumulator (pl.when init/finalize) so very large layers/batches don't have to fit
    # a single VMEM block.

    kernel = functools.partial(
        _bayes_linear_kernel,
        apply_relu=apply_relu,
        inv_temperature=float(1.0 / temperature),
        bf16_elementwise=_BF16_ELEMENTWISE,
        emit_weights=return_weights,
    )

    out_shapes = [
        jax.ShapeDtypeStruct((batch, out_f), out_dtype),     # activations (bf16 for hidden layers)
        jax.ShapeDtypeStruct((1, out_f), jnp.float32),       # per-output-feature KL (lane-dense)
    ]
    out_specs = [
        pl.BlockSpec((batch, t_out), lambda j: (0, j)),
        pl.BlockSpec((1, t_out), lambda j: (0, j)),
    ]
    if return_weights:
        out_shapes += [
            jax.ShapeDtypeStruct((in_f, out_f), jnp.bfloat16),  # sampled weight (bf16 writeback)
            jax.ShapeDtypeStruct((1, out_f), jnp.bfloat16),     # sampled bias
        ]
        out_specs += [
            pl.BlockSpec((in_f, t_out), lambda j: (0, j)),
            pl.BlockSpec((1, t_out), lambda j: (0, j)),
        ]

    results = pl.pallas_call(
        kernel,
        out_shape=tuple(out_shapes),
        grid=grid,
        in_specs=[
            pl.BlockSpec((batch, in_f), lambda j: (0, 0)),    # x (bf16), reused by every tile
            pl.BlockSpec((in_f, t_out), lambda j: (0, j)),    # mu_w
            pl.BlockSpec((in_f, t_out), lambda j: (0, j)),    # rho_w
            pl.BlockSpec((1, t_out), lambda j: (0, j)),       # mu_b
            pl.BlockSpec((1, t_out), lambda j: (0, j)),       # rho_b
            pl.BlockSpec((in_f, t_out), lambda j: (0, j)),    # eps_w
            pl.BlockSpec((1, t_out), lambda j: (0, j)),       # eps_b
        ],
        out_specs=tuple(out_specs),
        compiler_params=pltpu.CompilerParams(
            dimension_semantics=("parallel",),                # disjoint out_f tiles
            vmem_limit_bytes=_VMEM_LIMIT_BYTES,
        ),
    )(x, mu_w, rho_w, mu_b, rho_b, eps_w, eps_b)

    if return_weights:
        out, kl_cols, w, b = results
    else:
        out, kl_cols = results
        w = b = None
    kl = jnp.sum(kl_cols)   # tiny lane-dense reduction of the per-column KL partials
    return out, kl, w, b


def init_bnn_params(input_dim, output_dim, hidden_dims):
    """Deterministic init matching the torch module: mu = zeros, rho = ones.

    Weights are stored as (in_features, out_features) so the kernel matmul is x @ W
    with a lane-dense output (no transpose)."""
    dims = [input_dim] + list(hidden_dims) + [output_dim]
    params = []
    for i in range(len(dims) - 1):
        in_f, out_f = dims[i], dims[i + 1]
        params.append(dict(
            mu_w=jnp.zeros((in_f, out_f), jnp.float32),
            rho_w=jnp.ones((in_f, out_f), jnp.float32),
            mu_b=jnp.zeros((1, out_f), jnp.float32),
            rho_b=jnp.ones((1, out_f), jnp.float32),
        ))
    return params


def bnn_forward(params, x, key, temperature=1.0, return_weights=True):
    """Mirrors Bayesian_Neural_Network.forward: returns (x, kl_of_last_layer, weights_list)."""
    n_layers = len(params)
    keys = jax.random.split(key, 2 * n_layers)
    x = x.astype(jnp.bfloat16)                    # cast once; every layer's MXU consumes bf16
    kl_divergence = jnp.float32(0.0)
    kl = jnp.float32(0.0)
    weights = []
    for ind, p in enumerate(params):
        in_f, out_f = p["mu_w"].shape
        # eps drawn with the standard JAX PRNG (works on TPU and in interpret mode);
        # the reparameterization itself happens inside the kernel.
        eps_w = jax.random.normal(keys[2 * ind], (in_f, out_f), jnp.float32)
        eps_b = jax.random.normal(keys[2 * ind + 1], (1, out_f), jnp.float32)
        last = ind == n_layers - 1
        x, kl, w, b = bayes_linear_layer(
            x, p["mu_w"], p["rho_w"], p["mu_b"], p["rho_b"], eps_w, eps_b,
            apply_relu=not last, temperature=temperature, return_weights=return_weights,
            out_dtype=jnp.float32 if last else jnp.bfloat16)
        kl_divergence = kl_divergence + kl        # accumulated but (matching torch) not returned
        if return_weights:
            # Flattened in (in_features, out_features) order; the torch module flattens the
            # (out_f, in_f)-shaped weight, so the element order differs. Avoiding the transpose
            # saves a weight-sized HBM round trip per layer.
            weights.append(jnp.concatenate([w.reshape(-1), b.reshape(-1)], axis=0))
    # NOTE: matching the PyTorch module exactly, which returns the *last* layer's kl.
    return x, kl, weights


if __name__ == "__main__":
    input_dim, output_dim = 16, 8
    hidden_dims = [32, 32]
    batch = 2

    key = jax.random.PRNGKey(0)
    key, kx, kfwd = jax.random.split(key, 3)
    x = jax.random.normal(kx, (batch, input_dim), jnp.float32)

    params = init_bnn_params(input_dim, output_dim, hidden_dims)

    bnn_forward_jit = jax.jit(bnn_forward, static_argnames=("temperature", "return_weights"))
    out, kl_last, weights = bnn_forward_jit(params, x, kfwd, temperature=1.0)

    jax.block_until_ready(out)
    jax.block_until_ready(kl_last)
    for w in weights:
        jax.block_until_ready(w)

    assert out.shape == (batch, output_dim)
    assert out.dtype == jnp.float32
    assert len(weights) == len(hidden_dims) + 1
    assert weights[0].shape == (input_dim * hidden_dims[0] + hidden_dims[0],)
    assert bool(jnp.all(jnp.isfinite(out)))
    assert bool(jnp.isfinite(kl_last))
    # with mu=0, rho=1 the posterior equals the prior, so the KL must be ~0
    # (tolerance covers the bf16 elementwise path used on v6e/v7x)
    assert abs(float(kl_last)) < 0.5, f"unexpected KL: {float(kl_last)}"
    print("KERNEL_OK")
</pallas_src>

<mosaic_0001>
module attributes {stable_mosaic.version = 11 : i64} {
  func.func @_bayes_linear_kernel(%arg0: i32, %arg1: memref<2x16xbf16, #tpu.memory_space<vmem>>, %arg2: memref<16x32xf32, #tpu.memory_space<vmem>>, %arg3: memref<16x32xf32, #tpu.memory_space<vmem>>, %arg4: memref<1x32xf32, #tpu.memory_space<vmem>>, %arg5: memref<1x32xf32, #tpu.memory_space<vmem>>, %arg6: memref<16x32xf32, #tpu.memory_space<vmem>>, %arg7: memref<1x32xf32, #tpu.memory_space<vmem>>, %arg8: memref<2x32xbf16, #tpu.memory_space<vmem>>, %arg9: memref<1x32xf32, #tpu.memory_space<vmem>>, %arg10: memref<16x32xbf16, #tpu.memory_space<vmem>>, %arg11: memref<1x32xbf16, #tpu.memory_space<vmem>>) attributes {dimension_semantics = [#tpu.dimension_semantics<parallel>], iteration_bounds = array<i64: 1>, scalar_prefetch = 0 : i64, scratch_operands = 0 : i64, tpu.core_type = #tpu.core_type<tc>, window_params = [{pipeline_mode = #tpu.pipeline_mode<synchronous>, transform_indices = @transform_0, window_bounds = array<i64: 2, 16>}, {transform_indices = @transform_1, window_bounds = array<i64: 16, 32>}, {transform_indices = @transform_2, window_bounds = array<i64: 16, 32>}, {transform_indices = @transform_3, window_bounds = array<i64: 1, 32>}, {transform_indices = @transform_4, window_bounds = array<i64: 1, 32>}, {transform_indices = @transform_5, window_bounds = array<i64: 16, 32>}, {transform_indices = @transform_6, window_bounds = array<i64: 1, 32>}, {transform_indices = @transform_7, window_bounds = array<i64: 2, 32>}, {transform_indices = @transform_8, window_bounds = array<i64: 1, 32>}, {transform_indices = @transform_9, window_bounds = array<i64: 16, 32>}, {transform_indices = @transform_10, window_bounds = array<i64: 1, 32>}]} {
    %c0 = arith.constant 0 : index
    %c0_0 = arith.constant 0 : index
    %0 = vector.load %arg2[%c0, %c0_0] : memref<16x32xf32, #tpu.memory_space<vmem>>, vector<16x32xf32>
    %c0_1 = arith.constant 0 : index
    %c0_2 = arith.constant 0 : index
    %1 = vector.load %arg3[%c0_1, %c0_2] : memref<16x32xf32, #tpu.memory_space<vmem>>, vector<16x32xf32>
    %c0_3 = arith.constant 0 : index
    %c0_4 = arith.constant 0 : index
    %2 = vector.load %arg4[%c0_3, %c0_4] : memref<1x32xf32, #tpu.memory_space<vmem>>, vector<1x32xf32>
    %c0_5 = arith.constant 0 : index
    %c0_6 = arith.constant 0 : index
    %3 = vector.load %arg5[%c0_5, %c0_6] : memref<1x32xf32, #tpu.memory_space<vmem>>, vector<1x32xf32>
    %c0_7 = arith.constant 0 : index
    %c0_8 = arith.constant 0 : index
    %4 = vector.load %arg6[%c0_7, %c0_8] : memref<16x32xf32, #tpu.memory_space<vmem>>, vector<16x32xf32>
    %c0_9 = arith.constant 0 : index
    %c0_10 = arith.constant 0 : index
    %5 = vector.load %arg7[%c0_9, %c0_10] : memref<1x32xf32, #tpu.memory_space<vmem>>, vector<1x32xf32>
    %cst = arith.constant 0.000000e+00 : f32
    %6 = vector.broadcast %cst : f32 to vector<16x32xf32>
    %7 = arith.maximumf %1, %6 : vector<16x32xf32>
    %8 = math.absf %1 : vector<16x32xf32>
    %cst_11 = arith.constant 0.000000e+00 : f32
    %9 = vector.broadcast %cst_11 : f32 to vector<16x32xf32>
    %10 = arith.subf %9, %8 : vector<16x32xf32>
    %11 = math.exp %10 : vector<16x32xf32>
    %12 = math.log1p %11 : vector<16x32xf32>
    %13 = arith.addf %7, %12 : vector<16x32xf32>
    %cst_12 = arith.constant 0.000000e+00 : f32
    %14 = vector.broadcast %cst_12 : f32 to vector<1x32xf32>
    %15 = arith.maximumf %3, %14 : vector<1x32xf32>
    %16 = math.absf %3 : vector<1x32xf32>
    %cst_13 = arith.constant 0.000000e+00 : f32
    %17 = vector.broadcast %cst_13 : f32 to vector<1x32xf32>
    %18 = arith.subf %17, %16 : vector<1x32xf32>
    %19 = math.exp %18 : vector<1x32xf32>
    %20 = math.log1p %19 : vector<1x32xf32>
    %21 = arith.addf %15, %20 : vector<1x32xf32>
    %22 = math.log %13 : vector<16x32xf32>
    %23 = math.log %21 : vector<1x32xf32>
    %24 = arith.mulf %13, %4 : vector<16x32xf32>
    %25 = arith.addf %0, %24 : vector<16x32xf32>
    %26 = arith.mulf %21, %5 : vector<1x32xf32>
    %27 = arith.addf %2, %26 : vector<1x32xf32>
    %cst_14 = arith.constant dense<0.000000e+00> : vector<32xf32>
    %28 = vector.multi_reduction <add>, %22, %cst_14 [0] : vector<16x32xf32> to vector<32xf32>
    %29 = vector.shape_cast %28 : vector<32xf32> to vector<1x32xf32>
    %30 = arith.addf %29, %23 : vector<1x32xf32>
    %31 = arith.mulf %4, %4 : vector<16x32xf32>
    %cst_15 = arith.constant dense<0.000000e+00> : vector<32xf32>
    %32 = vector.multi_reduction <add>, %31, %cst_15 [0] : vector<16x32xf32> to vector<32xf32>
    %33 = vector.shape_cast %32 : vector<32xf32> to vector<1x32xf32>
    %34 = arith.mulf %5, %5 : vector<1x32xf32>
    %35 = arith.addf %33, %34 : vector<1x32xf32>
    %cst_16 = arith.constant -15.6219549 : f32
    %36 = vector.broadcast %cst_16 : f32 to vector<1x32xf32>
    %37 = arith.subf %36, %30 : vector<1x32xf32>
    %cst_17 = arith.constant 5.000000e-01 : f32
    %38 = vector.broadcast %cst_17 : f32 to vector<1x32xf32>
    %39 = arith.mulf %38, %35 : vector<1x32xf32>
    %40 = arith.subf %37, %39 : vector<1x32xf32>
    %41 = arith.mulf %25, %25 : vector<16x32xf32>
    %cst_18 = arith.constant dense<0.000000e+00> : vector<32xf32>
    %42 = vector.multi_reduction <add>, %41, %cst_18 [0] : vector<16x32xf32> to vector<32xf32>
    %43 = vector.shape_cast %42 : vector<32xf32> to vector<1x32xf32>
    %44 = arith.mulf %27, %27 : vector<1x32xf32>
    %45 = arith.addf %43, %44 : vector<1x32xf32>
    %cst_19 = arith.constant 0.28991285 : f32
    %46 = vector.broadcast %cst_19 : f32 to vector<1x32xf32>
    %47 = arith.mulf %46, %45 : vector<1x32xf32>
    %cst_20 = arith.constant -20.2546902 : f32
    %48 = vector.broadcast %cst_20 : f32 to vector<1x32xf32>
    %49 = arith.subf %48, %47 : vector<1x32xf32>
    %cst_21 = arith.constant 1.000000e+00 : f32
    %50 = vector.broadcast %cst_21 : f32 to vector<1x32xf32>
    %51 = arith.mulf %50, %40 : vector<1x32xf32>
    %52 = arith.subf %51, %49 : vector<1x32xf32>
    %c0_22 = arith.constant 0 : index
    %c0_23 = arith.constant 0 : index
    %53 = vector.load %arg9[%c0_22, %c0_23] : memref<1x32xf32, #tpu.memory_space<vmem>>, vector<1x32xf32>
    tpu.vector_store %arg9[%c0_22, %c0_23], %52 {strides = array<i32>} : memref<1x32xf32, #tpu.memory_space<vmem>>, vector<1x32xf32>,
    %54 = arith.truncf %25 : vector<16x32xf32> to vector<16x32xbf16>
    %c0_24 = arith.constant 0 : index
    %c0_25 = arith.constant 0 : index
    %55 = vector.load %arg1[%c0_24, %c0_25] : memref<2x16xbf16, #tpu.memory_space<vmem>>, vector<2x16xbf16>
    %cst_26 = arith.constant dense<0.000000e+00> : vector<2x32xf32>
    %56 = tpu.matmul %55, %54, %cst_26 {dimension_numbers = #tpu.dot_dimension_numbers<[1], [0], [0], [1], [0, 0, 1, 1], [], []>} : vector<2x16xbf16>, vector<16x32xbf16>, vector<2x32xf32> -> vector<2x32xf32>
    %57 = vector.broadcast %27 : vector<1x32xf32> to vector<2x32xf32>
    %58 = arith.addf %56, %57 : vector<2x32xf32>
    %cst_27 = arith.constant 0.000000e+00 : f32
    %59 = vector.broadcast %cst_27 : f32 to vector<2x32xf32>
    %60 = arith.maximumf %58, %59 : vector<2x32xf32>
    %61 = arith.truncf %60 : vector<2x32xf32> to vector<2x32xbf16>
    %c0_28 = arith.constant 0 : index
    %c0_29 = arith.constant 0 : index
    %62 = vector.load %arg8[%c0_28, %c0_29] : memref<2x32xbf16, #tpu.memory_space<vmem>>, vector<2x32xbf16>
    tpu.vector_store %arg8[%c0_28, %c0_29], %61 {strides = array<i32>} : memref<2x32xbf16, #tpu.memory_space<vmem>>, vector<2x32xbf16>,
    %c0_30 = arith.constant 0 : index
    %c0_31 = arith.constant 0 : index
    %63 = vector.load %arg10[%c0_30, %c0_31] : memref<16x32xbf16, #tpu.memory_space<vmem>>, vector<16x32xbf16>
    tpu.vector_store %arg10[%c0_30, %c0_31], %54 {strides = array<i32>} : memref<16x32xbf16, #tpu.memory_space<vmem>>, vector<16x32xbf16>,
    %64 = arith.truncf %27 : vector<1x32xf32> to vector<1x32xbf16>
    %c0_32 = arith.constant 0 : index
    %c0_33 = arith.constant 0 : index
    %65 = vector.load %arg11[%c0_32, %c0_33] : memref<1x32xbf16, #tpu.memory_space<vmem>>, vector<1x32xbf16>
    tpu.vector_store %arg11[%c0_32, %c0_33], %64 {strides = array<i32>} : memref<1x32xbf16, #tpu.memory_space<vmem>>, vector<1x32xbf16>,
    return
  }
  func.func @transform_0(%arg0: i32) -> (i32, i32) {
    %c0_i32 = arith.constant 0 : i32
    %c0_i32_0 = arith.constant 0 : i32
    %c0_i32_1 = arith.constant 0 : i32
    return %c0_i32, %c0_i32_0 : i32, i32
  }
  func.func @transform_1(%arg0: i32) -> (i32, i32) {
    %c0_i32 = arith.constant 0 : i32
    %c0_i32_0 = arith.constant 0 : i32
    return %c0_i32, %arg0 : i32, i32
  }
  func.func @transform_2(%arg0: i32) -> (i32, i32) {
    %c0_i32 = arith.constant 0 : i32
    %c0_i32_0 = arith.constant 0 : i32
    return %c0_i32, %arg0 : i32, i32
  }
  func.func @transform_3(%arg0: i32) -> (i32, i32) {
    %c0_i32 = arith.constant 0 : i32
    %c0_i32_0 = arith.constant 0 : i32
    return %c0_i32, %arg0 : i32, i32
  }
  func.func @transform_4(%arg0: i32) -> (i32, i32) {
    %c0_i32 = arith.constant 0 : i32
    %c0_i32_0 = arith.constant 0 : i32
    return %c0_i32, %arg0 : i32, i32
  }
  func.func @transform_5(%arg0: i32) -> (i32, i32) {
    %c0_i32 = arith.constant 0 : i32
    %c0_i32_0 = arith.constant 0 : i32
    return %c0_i32, %arg0 : i32, i32
  }
  func.func @transform_6(%arg0: i32) -> (i32, i32) {
    %c0_i32 = arith.constant 0 : i32
    %c0_i32_0 = arith.constant 0 : i32
    return %c0_i32, %arg0 : i32, i32
  }
  func.func @transform_7(%arg0: i32) -> (i32, i32) {
    %c0_i32 = arith.constant 0 : i32
    %c0_i32_0 = arith.constant 0 : i32
    return %c0_i32, %arg0 : i32, i32
  }
  func.func @transform_8(%arg0: i32) -> (i32, i32) {
    %c0_i32 = arith.constant 0 : i32
    %c0_i32_0 = arith.constant 0 : i32
    return %c0_i32, %arg0 : i32, i32
  }
  func.func @transform_9(%arg0: i32) -> (i32, i32) {
    %c0_i32 = arith.constant 0 : i32
    %c0_i32_0 = arith.constant 0 : i32
    return %c0_i32, %arg0 : i32, i32
  }
  func.func @transform_10(%arg0: i32) -> (i32, i32) {
    %c0_i32 = arith.constant 0 : i32
    %c0_i32_0 = arith.constant 0 : i32
    return %c0_i32, %arg0 : i32, i32
  }
}

module attributes {stable_mosaic.version = 11 : i64} {
  func.func @_bayes_linear_kernel(%arg0: i32, %arg1: memref<2x32xbf16, #tpu.memory_space<vmem>>, %arg2: memref<32x32xf32, #tpu.memory_space<vmem>>, %arg3: memref<32x32xf32, #tpu.memory_space<vmem>>, %arg4: memref<1x32xf32, #tpu.memory_space<vmem>>, %arg5: memref<1x32xf32, #tpu.memory_space<vmem>>, %arg6: memref<32x32xf32, #tpu.memory_space<vmem>>, %arg7: memref<1x32xf32, #tpu.memory_space<vmem>>, %arg8: memref<2x32xbf16, #tpu.memory_space<vmem>>, %arg9: memref<1x32xf32, #tpu.memory_space<vmem>>, %arg10: memref<32x32xbf16, #tpu.memory_space<vmem>>, %arg11: memref<1x32xbf16, #tpu.memory_space<vmem>>) attributes {dimension_semantics = [#tpu.dimension_semantics<parallel>], iteration_bounds = array<i64: 1>, scalar_prefetch = 0 : i64, scratch_operands = 0 : i64, tpu.core_type = #tpu.core_type<tc>, window_params = [{pipeline_mode = #tpu.pipeline_mode<synchronous>, transform_indices = @transform_0, window_bounds = array<i64: 2, 32>}, {transform_indices = @transform_1, window_bounds = array<i64: 32, 32>}, {transform_indices = @transform_2, window_bounds = array<i64: 32, 32>}, {transform_indices = @transform_3, window_bounds = array<i64: 1, 32>}, {transform_indices = @transform_4, window_bounds = array<i64: 1, 32>}, {transform_indices = @transform_5, window_bounds = array<i64: 32, 32>}, {transform_indices = @transform_6, window_bounds = array<i64: 1, 32>}, {transform_indices = @transform_7, window_bounds = array<i64: 2, 32>}, {transform_indices = @transform_8, window_bounds = array<i64: 1, 32>}, {transform_indices = @transform_9, window_bounds = array<i64: 32, 32>}, {transform_indices = @transform_10, window_bounds = array<i64: 1, 32>}]} {
    %c0 = arith.constant 0 : index
    %c0_0 = arith.constant 0 : index
    %0 = vector.load %arg2[%c0, %c0_0] : memref<32x32xf32, #tpu.memory_space<vmem>>, vector<32x32xf32>
    %c0_1 = arith.constant 0 : index
    %c0_2 = arith.constant 0 : index
    %1 = vector.load %arg3[%c0_1, %c0_2] : memref<32x32xf32, #tpu.memory_space<vmem>>, vector<32x32xf32>
    %c0_3 = arith.constant 0 : index
    %c0_4 = arith.constant 0 : index
    %2 = vector.load %arg4[%c0_3, %c0_4] : memref<1x32xf32, #tpu.memory_space<vmem>>, vector<1x32xf32>
    %c0_5 = arith.constant 0 : index
    %c0_6 = arith.constant 0 : index
    %3 = vector.load %arg5[%c0_5, %c0_6] : memref<1x32xf32, #tpu.memory_space<vmem>>, vector<1x32xf32>
    %c0_7 = arith.constant 0 : index
    %c0_8 = arith.constant 0 : index
    %4 = vector.load %arg6[%c0_7, %c0_8] : memref<32x32xf32, #tpu.memory_space<vmem>>, vector<32x32xf32>
    %c0_9 = arith.constant 0 : index
    %c0_10 = arith.constant 0 : index
    %5 = vector.load %arg7[%c0_9, %c0_10] : memref<1x32xf32, #tpu.memory_space<vmem>>, vector<1x32xf32>
    %cst = arith.constant 0.000000e+00 : f32
    %6 = vector.broadcast %cst : f32 to vector<32x32xf32>
    %7 = arith.maximumf %1, %6 : vector<32x32xf32>
    %8 = math.absf %1 : vector<32x32xf32>
    %cst_11 = arith.constant 0.000000e+00 : f32
    %9 = vector.broadcast %cst_11 : f32 to vector<32x32xf32>
    %10 = arith.subf %9, %8 : vector<32x32xf32>
    %11 = math.exp %10 : vector<32x32xf32>
    %12 = math.log1p %11 : vector<32x32xf32>
    %13 = arith.addf %7, %12 : vector<32x32xf32>
    %cst_12 = arith.constant 0.000000e+00 : f32
    %14 = vector.broadcast %cst_12 : f32 to vector<1x32xf32>
    %15 = arith.maximumf %3, %14 : vector<1x32xf32>
    %16 = math.absf %3 : vector<1x32xf32>
    %cst_13 = arith.constant 0.000000e+00 : f32
    %17 = vector.broadcast %cst_13 : f32 to vector<1x32xf32>
    %18 = arith.subf %17, %16 : vector<1x32xf32>
    %19 = math.exp %18 : vector<1x32xf32>
    %20 = math.log1p %19 : vector<1x32xf32>
    %21 = arith.addf %15, %20 : vector<1x32xf32>
    %22 = math.log %13 : vector<32x32xf32>
    %23 = math.log %21 : vector<1x32xf32>
    %24 = arith.mulf %13, %4 : vector<32x32xf32>
    %25 = arith.addf %0, %24 : vector<32x32xf32>
    %26 = arith.mulf %21, %5 : vector<1x32xf32>
    %27 = arith.addf %2, %26 : vector<1x32xf32>
    %cst_14 = arith.constant dense<0.000000e+00> : vector<32xf32>
    %28 = vector.multi_reduction <add>, %22, %cst_14 [0] : vector<32x32xf32> to vector<32xf32>
    %29 = vector.shape_cast %28 : vector<32xf32> to vector<1x32xf32>
    %30 = arith.addf %29, %23 : vector<1x32xf32>
    %31 = arith.mulf %4, %4 : vector<32x32xf32>
    %cst_15 = arith.constant dense<0.000000e+00> : vector<32xf32>
    %32 = vector.multi_reduction <add>, %31, %cst_15 [0] : vector<32x32xf32> to vector<32xf32>
    %33 = vector.shape_cast %32 : vector<32xf32> to vector<1x32xf32>
    %34 = arith.mulf %5, %5 : vector<1x32xf32>
    %35 = arith.addf %33, %34 : vector<1x32xf32>
    %cst_16 = arith.constant -30.3249722 : f32
    %36 = vector.broadcast %cst_16 : f32 to vector<1x32xf32>
    %37 = arith.subf %36, %30 : vector<1x32xf32>
    %cst_17 = arith.constant 5.000000e-01 : f32
    %38 = vector.broadcast %cst_17 : f32 to vector<1x32xf32>
    %39 = arith.mulf %38, %35 : vector<1x32xf32>
    %40 = arith.subf %37, %39 : vector<1x32xf32>
    %41 = arith.mulf %25, %25 : vector<32x32xf32>
    %cst_18 = arith.constant dense<0.000000e+00> : vector<32xf32>
    %42 = vector.multi_reduction <add>, %41, %cst_18 [0] : vector<32x32xf32> to vector<32xf32>
    %43 = vector.shape_cast %42 : vector<32xf32> to vector<1x32xf32>
    %44 = arith.mulf %27, %27 : vector<1x32xf32>
    %45 = arith.addf %43, %44 : vector<1x32xf32>
    %cst_19 = arith.constant 0.28991285 : f32
    %46 = vector.broadcast %cst_19 : f32 to vector<1x32xf32>
    %47 = arith.mulf %46, %45 : vector<1x32xf32>
    %cst_20 = arith.constant -39.3179283 : f32
    %48 = vector.broadcast %cst_20 : f32 to vector<1x32xf32>
    %49 = arith.subf %48, %47 : vector<1x32xf32>
    %cst_21 = arith.constant 1.000000e+00 : f32
    %50 = vector.broadcast %cst_21 : f32 to vector<1x32xf32>
    %51 = arith.mulf %50, %40 : vector<1x32xf32>
    %52 = arith.subf %51, %49 : vector<1x32xf32>
    %c0_22 = arith.constant 0 : index
    %c0_23 = arith.constant 0 : index
    %53 = vector.load %arg9[%c0_22, %c0_23] : memref<1x32xf32, #tpu.memory_space<vmem>>, vector<1x32xf32>
    tpu.vector_store %arg9[%c0_22, %c0_23], %52 {strides = array<i32>} : memref<1x32xf32, #tpu.memory_space<vmem>>, vector<1x32xf32>,
    %54 = arith.truncf %25 : vector<32x32xf32> to vector<32x32xbf16>
    %c0_24 = arith.constant 0 : index
    %c0_25 = arith.constant 0 : index
    %55 = vector.load %arg1[%c0_24, %c0_25] : memref<2x32xbf16, #tpu.memory_space<vmem>>, vector<2x32xbf16>
    %cst_26 = arith.constant dense<0.000000e+00> : vector<2x32xf32>
    %56 = tpu.matmul %55, %54, %cst_26 {dimension_numbers = #tpu.dot_dimension_numbers<[1], [0], [0], [1], [0, 0, 1, 1], [], []>} : vector<2x32xbf16>, vector<32x32xbf16>, vector<2x32xf32> -> vector<2x32xf32>
    %57 = vector.broadcast %27 : vector<1x32xf32> to vector<2x32xf32>
    %58 = arith.addf %56, %57 : vector<2x32xf32>
    %cst_27 = arith.constant 0.000000e+00 : f32
    %59 = vector.broadcast %cst_27 : f32 to vector<2x32xf32>
    %60 = arith.maximumf %58, %59 : vector<2x32xf32>
    %61 = arith.truncf %60 : vector<2x32xf32> to vector<2x32xbf16>
    %c0_28 = arith.constant 0 : index
    %c0_29 = arith.constant 0 : index
    %62 = vector.load %arg8[%c0_28, %c0_29] : memref<2x32xbf16, #tpu.memory_space<vmem>>, vector<2x32xbf16>
    tpu.vector_store %arg8[%c0_28, %c0_29], %61 {strides = array<i32>} : memref<2x32xbf16, #tpu.memory_space<vmem>>, vector<2x32xbf16>,
    %c0_30 = arith.constant 0 : index
    %c0_31 = arith.constant 0 : index
    %63 = vector.load %arg10[%c0_30, %c0_31] : memref<32x32xbf16, #tpu.memory_space<vmem>>, vector<32x32xbf16>
    tpu.vector_store %arg10[%c0_30, %c0_31], %54 {strides = array<i32>} : memref<32x32xbf16, #tpu.memory_space<vmem>>, vector<32x32xbf16>,
    %64 = arith.truncf %27 : vector<1x32xf32> to vector<1x32xbf16>
    %c0_32 = arith.constant 0 : index
    %c0_33 = arith.constant 0 : index
    %65 = vector.load %arg11[%c0_32, %c0_33] : memref<1x32xbf16, #tpu.memory_space<vmem>>, vector<1x32xbf16>
    tpu.vector_store %arg11[%c0_32, %c0_33], %64 {strides = array<i32>} : memref<1x32xbf16, #tpu.memory_space<vmem>>, vector<1x32xbf16>,
    return
  }
  func.func @transform_0(%arg0: i32) -> (i32, i32) {
    %c0_i32 = arith.constant 0 : i32
    %c0_i32_0 = arith.constant 0 : i32
    %c0_i32_1 = arith.constant 0 : i32
    return %c0_i32, %c0_i32_0 : i32, i32
  }
  func.func @transform_1(%arg0: i32) -> (i32, i32) {
    %c0_i32 = arith.constant 0 : i32
    %c0_i32_0 = arith.constant 0 : i32
    return %c0_i32, %arg0 : i32, i32
  }
  func.func @transform_2(%arg0: i32) -> (i32, i32) {
    %c0_i32 = arith.constant 0 : i32
    %c0_i32_0 = arith.constant 0 : i32
    return %c0_i32, %arg0 : i32, i32
  }
  func.func @transform_3(%arg0: i32) -> (i32, i32) {
    %c0_i32 = arith.constant 0 : i32
    %c0_i32_0 = arith.constant 0 : i32
    return %c0_i32, %arg0 : i32, i32
  }
  func.func @transform_4(%arg0: i32) -> (i32, i32) {
    %c0_i32 = arith.constant 0 : i32
    %c0_i32_0 = arith.constant 0 : i32
    return %c0_i32, %arg0 : i32, i32
  }
  func.func @transform_5(%arg0: i32) -> (i32, i32) {
    %c0_i32 = arith.constant 0 : i32
    %c0_i32_0 = arith.constant 0 : i32
    return %c0_i32, %arg0 : i32, i32
  }
  func.func @transform_6(%arg0: i32) -> (i32, i32) {
    %c0_i32 = arith.constant 0 : i32
    %c0_i32_0 = arith.constant 0 : i32
    return %c0_i32, %arg0 : i32, i32
  }
  func.func @transform_7(%arg0: i32) -> (i32, i32) {
    %c0_i32 = arith.constant 0 : i32
    %c0_i32_0 = arith.constant 0 : i32
    return %c0_i32, %arg0 : i32, i32
  }
  func.func @transform_8(%arg0: i32) -> (i32, i32) {
    %c0_i32 = arith.constant 0 : i32
    %c0_i32_0 = arith.constant 0 : i32
    return %c0_i32, %arg0 : i32, i32
  }
  func.func @transform_9(%arg0: i32) -> (i32, i32) {
    %c0_i32 = arith.constant 0 : i32
    %c0_i32_0 = arith.constant 0 : i32
    return %c0_i32, %arg0 : i32, i32
  }
  func.func @transform_10(%arg0: i32) -> (i32, i32) {
    %c0_i32 = arith.constant 0 : i32
    %c0_i32_0 = arith.constant 0 : i32
    return %c0_i32, %arg0 : i32, i32
  }
}

module attributes {stable_mosaic.version = 11 : i64} {
  func.func @_bayes_linear_kernel(%arg0: i32, %arg1: memref<2x32xbf16, #tpu.memory_space<vmem>>, %arg2: memref<32x8xf32, #tpu.memory_space<vmem>>, %arg3: memref<32x8xf32, #tpu.memory_space<vmem>>, %arg4: memref<1x8xf32, #tpu.memory_space<vmem>>, %arg5: memref<1x8xf32, #tpu.memory_space<vmem>>, %arg6: memref<32x8xf32, #tpu.memory_space<vmem>>, %arg7: memref<1x8xf32, #tpu.memory_space<vmem>>, %arg8: memref<2x8xf32, #tpu.memory_space<vmem>>, %arg9: memref<1x8xf32, #tpu.memory_space<vmem>>, %arg10: memref<32x8xbf16, #tpu.memory_space<vmem>>, %arg11: memref<1x8xbf16, #tpu.memory_space<vmem>>) attributes {dimension_semantics = [#tpu.dimension_semantics<parallel>], iteration_bounds = array<i64: 1>, scalar_prefetch = 0 : i64, scratch_operands = 0 : i64, tpu.core_type = #tpu.core_type<tc>, window_params = [{pipeline_mode = #tpu.pipeline_mode<synchronous>, transform_indices = @transform_0, window_bounds = array<i64: 2, 32>}, {transform_indices = @transform_1, window_bounds = array<i64: 32, 8>}, {transform_indices = @transform_2, window_bounds = array<i64: 32, 8>}, {transform_indices = @transform_3, window_bounds = array<i64: 1, 8>}, {transform_indices = @transform_4, window_bounds = array<i64: 1, 8>}, {transform_indices = @transform_5, window_bounds = array<i64: 32, 8>}, {transform_indices = @transform_6, window_bounds = array<i64: 1, 8>}, {transform_indices = @transform_7, window_bounds = array<i64: 2, 8>}, {transform_indices = @transform_8, window_bounds = array<i64: 1, 8>}, {transform_indices = @transform_9, window_bounds = array<i64: 32, 8>}, {transform_indices = @transform_10, window_bounds = array<i64: 1, 8>}]} {
    %c0 = arith.constant 0 : index
    %c0_0 = arith.constant 0 : index
    %0 = vector.load %arg2[%c0, %c0_0] : memref<32x8xf32, #tpu.memory_space<vmem>>, vector<32x8xf32>
    %c0_1 = arith.constant 0 : index
    %c0_2 = arith.constant 0 : index
    %1 = vector.load %arg3[%c0_1, %c0_2] : memref<32x8xf32, #tpu.memory_space<vmem>>, vector<32x8xf32>
    %c0_3 = arith.constant 0 : index
    %c0_4 = arith.constant 0 : index
    %2 = vector.load %arg4[%c0_3, %c0_4] : memref<1x8xf32, #tpu.memory_space<vmem>>, vector<1x8xf32>
    %c0_5 = arith.constant 0 : index
    %c0_6 = arith.constant 0 : index
    %3 = vector.load %arg5[%c0_5, %c0_6] : memref<1x8xf32, #tpu.memory_space<vmem>>, vector<1x8xf32>
    %c0_7 = arith.constant 0 : index
    %c0_8 = arith.constant 0 : index
    %4 = vector.load %arg6[%c0_7, %c0_8] : memref<32x8xf32, #tpu.memory_space<vmem>>, vector<32x8xf32>
    %c0_9 = arith.constant 0 : index
    %c0_10 = arith.constant 0 : index
    %5 = vector.load %arg7[%c0_9, %c0_10] : memref<1x8xf32, #tpu.memory_space<vmem>>, vector<1x8xf32>
    %cst = arith.constant 0.000000e+00 : f32
    %6 = vector.broadcast %cst : f32 to vector<32x8xf32>
    %7 = arith.maximumf %1, %6 : vector<32x8xf32>
    %8 = math.absf %1 : vector<32x8xf32>
    %cst_11 = arith.constant 0.000000e+00 : f32
    %9 = vector.broadcast %cst_11 : f32 to vector<32x8xf32>
    %10 = arith.subf %9, %8 : vector<32x8xf32>
    %11 = math.exp %10 : vector<32x8xf32>
    %12 = math.log1p %11 : vector<32x8xf32>
    %13 = arith.addf %7, %12 : vector<32x8xf32>
    %cst_12 = arith.constant 0.000000e+00 : f32
    %14 = vector.broadcast %cst_12 : f32 to vector<1x8xf32>
    %15 = arith.maximumf %3, %14 : vector<1x8xf32>
    %16 = math.absf %3 : vector<1x8xf32>
    %cst_13 = arith.constant 0.000000e+00 : f32
    %17 = vector.broadcast %cst_13 : f32 to vector<1x8xf32>
    %18 = arith.subf %17, %16 : vector<1x8xf32>
    %19 = math.exp %18 : vector<1x8xf32>
    %20 = math.log1p %19 : vector<1x8xf32>
    %21 = arith.addf %15, %20 : vector<1x8xf32>
    %22 = math.log %13 : vector<32x8xf32>
    %23 = math.log %21 : vector<1x8xf32>
    %24 = arith.mulf %13, %4 : vector<32x8xf32>
    %25 = arith.addf %0, %24 : vector<32x8xf32>
    %26 = arith.mulf %21, %5 : vector<1x8xf32>
    %27 = arith.addf %2, %26 : vector<1x8xf32>
    %cst_14 = arith.constant dense<0.000000e+00> : vector<8xf32>
    %28 = vector.multi_reduction <add>, %22, %cst_14 [0] : vector<32x8xf32> to vector<8xf32>
    %29 = vector.shape_cast %28 : vector<8xf32> to vector<1x8xf32>
    %30 = arith.addf %29, %23 : vector<1x8xf32>
    %31 = arith.mulf %4, %4 : vector<32x8xf32>
    %cst_15 = arith.constant dense<0.000000e+00> : vector<8xf32>
    %32 = vector.multi_reduction <add>, %31, %cst_15 [0] : vector<32x8xf32> to vector<8xf32>
    %33 = vector.shape_cast %32 : vector<8xf32> to vector<1x8xf32>
    %34 = arith.mulf %5, %5 : vector<1x8xf32>
    %35 = arith.addf %33, %34 : vector<1x8xf32>
    %cst_16 = arith.constant -30.3249722 : f32
    %36 = vector.broadcast %cst_16 : f32 to vector<1x8xf32>
    %37 = arith.subf %36, %30 : vector<1x8xf32>
    %cst_17 = arith.constant 5.000000e-01 : f32
    %38 = vector.broadcast %cst_17 : f32 to vector<1x8xf32>
    %39 = arith.mulf %38, %35 : vector<1x8xf32>
    %40 = arith.subf %37, %39 : vector<1x8xf32>
    %41 = arith.mulf %25, %25 : vector<32x8xf32>
    %cst_18 = arith.constant dense<0.000000e+00> : vector<8xf32>
    %42 = vector.multi_reduction <add>, %41, %cst_18 [0] : vector<32x8xf32> to vector<8xf32>
    %43 = vector.shape_cast %42 : vector<8xf32> to vector<1x8xf32>
    %44 = arith.mulf %27, %27 : vector<1x8xf32>
    %45 = arith.addf %43, %44 : vector<1x8xf32>
    %cst_19 = arith.constant 0.28991285 : f32
    %46 = vector.broadcast %cst_19 : f32 to vector<1x8xf32>
    %47 = arith.mulf %46, %45 : vector<1x8xf32>
    %cst_20 = arith.constant -39.3179283 : f32
    %48 = vector.broadcast %cst_20 : f32 to vector<1x8xf32>
    %49 = arith.subf %48, %47 : vector<1x8xf32>
    %cst_21 = arith.constant 1.000000e+00 : f32
    %50 = vector.broadcast %cst_21 : f32 to vector<1x8xf32>
    %51 = arith.mulf %50, %40 : vector<1x8xf32>
    %52 = arith.subf %51, %49 : vector<1x8xf32>
    %c0_22 = arith.constant 0 : index
    %c0_23 = arith.constant 0 : index
    %53 = vector.load %arg9[%c0_22, %c0_23] : memref<1x8xf32, #tpu.memory_space<vmem>>, vector<1x8xf32>
    tpu.vector_store %arg9[%c0_22, %c0_23], %52 {strides = array<i32>} : memref<1x8xf32, #tpu.memory_space<vmem>>, vector<1x8xf32>,
    %54 = arith.truncf %25 : vector<32x8xf32> to vector<32x8xbf16>
    %c0_24 = arith.constant 0 : index
    %c0_25 = arith.constant 0 : index
    %55 = vector.load %arg1[%c0_24, %c0_25] : memref<2x32xbf16, #tpu.memory_space<vmem>>, vector<2x32xbf16>
    %cst_26 = arith.constant dense<0.000000e+00> : vector<2x8xf32>
    %56 = tpu.matmul %55, %54, %cst_26 {dimension_numbers = #tpu.dot_dimension_numbers<[1], [0], [0], [1], [0, 0, 1, 1], [], []>} : vector<2x32xbf16>, vector<32x8xbf16>, vector<2x8xf32> -> vector<2x8xf32>
    %57 = vector.broadcast %27 : vector<1x8xf32> to vector<2x8xf32>
    %58 = arith.addf %56, %57 : vector<2x8xf32>
    %c0_27 = arith.constant 0 : index
    %c0_28 = arith.constant 0 : index
    %59 = vector.load %arg8[%c0_27, %c0_28] : memref<2x8xf32, #tpu.memory_space<vmem>>, vector<2x8xf32>
    tpu.vector_store %arg8[%c0_27, %c0_28], %58 {strides = array<i32>} : memref<2x8xf32, #tpu.memory_space<vmem>>, vector<2x8xf32>,
    %c0_29 = arith.constant 0 : index
    %c0_30 = arith.constant 0 : index
    %60 = vector.load %arg10[%c0_29, %c0_30] : memref<32x8xbf16, #tpu.memory_space<vmem>>, vector<32x8xbf16>
    tpu.vector_store %arg10[%c0_29, %c0_30], %54 {strides = array<i32>} : memref<32x8xbf16, #tpu.memory_space<vmem>>, vector<32x8xbf16>,
    %61 = arith.truncf %27 : vector<1x8xf32> to vector<1x8xbf16>
    %c0_31 = arith.constant 0 : index
    %c0_32 = arith.constant 0 : index
    %62 = vector.load %arg11[%c0_31, %c0_32] : memref<1x8xbf16, #tpu.memory_space<vmem>>, vector<1x8xbf16>
    tpu.vector_store %arg11[%c0_31, %c0_32], %61 {strides = array<i32>} : memref<1x8xbf16, #tpu.memory_space<vmem>>, vector<1x8xbf16>,
    return
  }
  func.func @transform_0(%arg0: i32) -> (i32, i32) {
    %c0_i32 = arith.constant 0 : i32
    %c0_i32_0 = arith.constant 0 : i32
    %c0_i32_1 = arith.constant 0 : i32
    return %c0_i32, %c0_i32_0 : i32, i32
  }
  func.func @transform_1(%arg0: i32) -> (i32, i32) {
    %c0_i32 = arith.constant 0 : i32
    %c0_i32_0 = arith.constant 0 : i32
    return %c0_i32, %arg0 : i32, i32
  }
  func.func @transform_2(%arg0: i32) -> (i32, i32) {
    %c0_i32 = arith.constant 0 : i32
    %c0_i32_0 = arith.constant 0 : i32
    return %c0_i32, %arg0 : i32, i32
  }
  func.func @transform_3(%arg0: i32) -> (i32, i32) {
    %c0_i32 = arith.constant 0 : i32
    %c0_i32_0 = arith.constant 0 : i32
    return %c0_i32, %arg0 : i32, i32
  }
  func.func @transform_4(%arg0: i32) -> (i32, i32) {
    %c0_i32 = arith.constant 0 : i32
    %c0_i32_0 = arith.constant 0 : i32
    return %c0_i32, %arg0 : i32, i32
  }
  func.func @transform_5(%arg0: i32) -> (i32, i32) {
    %c0_i32 = arith.constant 0 : i32
    %c0_i32_0 = arith.constant 0 : i32
    return %c0_i32, %arg0 : i32, i32
  }
  func.func @transform_6(%arg0: i32) -> (i32, i32) {
    %c0_i32 = arith.constant 0 : i32
    %c0_i32_0 = arith.constant 0 : i32
    return %c0_i32, %arg0 : i32, i32
  }
  func.func @transform_7(%arg0: i32) -> (i32, i32) {
    %c0_i32 = arith.constant 0 : i32
    %c0_i32_0 = arith.constant 0 : i32
    return %c0_i32, %arg0 : i32, i32
  }
  func.func @transform_8(%arg0: i32) -> (i32, i32) {
    %c0_i32 = arith.constant 0 : i32
    %c0_i32_0 = arith.constant 0 : i32
    return %c0_i32, %arg0 : i32, i32
  }
  func.func @transform_9(%arg0: i32) -> (i32, i32) {
    %c0_i32 = arith.constant 0 : i32
    %c0_i32_0 = arith.constant 0 : i32
    return %c0_i32, %arg0 : i32, i32
  }
  func.func @transform_10(%arg0: i32) -> (i32, i32) {
    %c0_i32 = arith.constant 0 : i32
    %c0_i32_0 = arith.constant 0 : i32
    return %c0_i32, %arg0 : i32, i32
  }
}

</mosaic_0001>

<bundles_post_ra>
// kernel: bnn_forward.6
= control target key start
LH: loop header
LB: loop body
LE: loop exit
PB: predicated region body
PF: predicated region fallthrough
CT: control target
= control target key end

     0   :  { %s542_s0 = inlined_call_operand.vmem [shape: bf16[2,32], index: 0, kind: input, shape index: {}]   ;;  %s543_s1 = inlined_call_operand.vmem [shape: f32[32,32], index: 1, kind: input, shape index: {}]   ;;  %s544_s2 = inlined_call_operand.vmem [shape: f32[32,32], index: 2, kind: input, shape index: {}]   ;;  %s545_s3 = inlined_call_operand.vmem [shape: f32[1,32], index: 3, kind: input, shape index: {}]   ;;  %s546_s4 = inlined_call_operand.vmem [shape: f32[1,32], index: 4, kind: input, shape index: {}]   ;;  %s547_s5 = inlined_call_operand.vmem [shape: f32[32,32], index: 5, kind: input, shape index: {}]   ;;  %s548_s6 = inlined_call_operand.vmem [shape: f32[1,32], index: 6, kind: input, shape index: {}]   ;;  %s549_s7 = inlined_call_operand.vmem [shape: bf16[2,32], index: 7, kind: output, shape index: {0}]   ;;  %s550_s8 = inlined_call_operand.hbm [shape: f32[1,32], index: 8, kind: output, shape index: {1}]   ;;  %s551_s9 = inlined_call_operand.vmem [shape: bf16[32,32], index: 9, kind: output, shape index: {2}]   ;;  %s552_s10 = inlined_call_operand.vmem [shape: bf16[1,32], index: 10, kind: output, shape index: {3}]  }
   0x1   :  { %v399_v0 = vld [vmem:[%s544_s2 + $0x10] sm:$0xff]  ;;  %v404_v1 = vld [vmem:[%s544_s2 + $0x18] sm:$0xff]  ;;  %v411_v4 = vld [vmem:[%s544_s2] sm:$0xff] }
   0x2   :  { %v53_v2 = vand.u32 2147483647, %v399_v0  ;;  %v54_v3 = vand.u32 2147483647, %v404_v1  ;;  %v416_v6 = vld [vmem:[%s544_s2 + $0x8] sm:$0xff]  ;;  %v421_v7 = vld [vmem:[%s547_s5 + $0x10] sm:$0xff] }
   0x3   :  { %v426_v8 = vld [vmem:[%s547_s5 + $0x18] sm:$0xff]  ;;  %v51_v10 = vand.u32 2147483647, %v411_v4  ;;  %v52_v12 = vand.u32 2147483647, %v416_v6 }
   0x4   :  { %v57_v5 = vsub.f32 0.0, %v53_v2  ;;  %v58_v9 = vsub.f32 0.0, %v54_v3 }
   0x6   :  { %v63_v11 = vmul.f32 1.442695, %v57_v5 }
   0x7   :  { %16 = vsyncpa [#allocation3], 0  ;;  %v65_v13 = vmul.f32 1.442695, %v58_v9  ;;  %v159_v14 = vmul.f32 %v421_v7, %v421_v7  ;;  %v160_v15 = vmul.f32 %v426_v8, %v426_v8  ;;  %v55_v16 = vsub.f32 0.0, %v51_v10  ;;  %v441_v21 = vld [vmem:[%s547_s5] sm:$0xff] }
   0x8   :  { %284 = vpow2.f32 %v63_v11  ;;  %vm142_vm0 = vcmask 261120   ;;  %v56_v17 = vsub.f32 0.0, %v52_v12  ;;  %v446_v22 = vld [vmem:[%s547_s5 + $0x8] sm:$0xff]  ;;  %v157_v24 = vmul.f32 %v441_v21, %v441_v21  ;;  %s263_s5 = sshll.u32 %s550_s8, 4  ;;  %s264_s5 = int_to_ptr.hbm [resolvable:$true] %s263_s5 }
   0x9   :  { %286 = vpow2.f32 %v65_v13  ;;  %v164_v18 = vsel %vm142_vm0, %v159_v14, 0.0  ;;  %v436_v19 = vsel %vm142_vm0, %v160_v15, 0.0  ;;  %v59_v20 = vmul.f32 1.442695, %v55_v16 }
   0xa   :  { %v61_v23 = vmul.f32 1.442695, %v56_v17  ;;  %v158_v25 = vmul.f32 %v446_v22, %v446_v22  ;;  %v161_v26 = vsel %vm142_vm0, %v157_v24, 0.0  ;;  %v49_v51 = vmax.f32 %v399_v0, 0.0 }
   0xb   :  { %288 = vpow2.f32 %v59_v20  ;;  %v50_v56 = vmax.f32 %v404_v1, 0.0  ;;  %v47_v59 = vmax.f32 %v411_v4, 0.0  ;;  %v48_v63 = vmax.f32 %v416_v6, 0.0  ;;  %v34_v4 = vld [vmem:[%s543_s1 + $0x10] sm:$0xff]  ;;  %v35_v6 = vld [vmem:[%s543_s1 + $0x18] sm:$0xff] }
   0xc   :  { %290 = vpow2.f32 %v61_v23  ;;  %v162_v27 = vsel %vm142_vm0, %v158_v25, 0.0  ;;  %vm242_vm5 = vcmask 257024   ;;  %vm201_vm7 = vcmask 253952  }
   0xd   :  { %v163_v29 = vadd.f32 %v162_v27, %v161_v26  ;;  %vm249_vm8 = vsmask.f32 256 }
   0xe   :  { %v285_v28 = vpop.eup %284  ;;  %vm250_vm9 = vmand %vm201_vm7, %vm249_vm8 }
   0xf   :  { %v287_v30 = vpop.eup %286  ;;  %v85_v31 = vadd.f32 1.0, %v285_v28  ;;  %v88_v32 = vmul.f32 -0.5, %v285_v28  ;;  %v454_v35 = vadd.f32 %v164_v18, %v163_v29  ;;  %v91_v40 = vand.u32 2147483647, %v285_v28  ;;  %v32_v18 = vld [vmem:[%s543_s1] sm:$0xff] }
  0x10   :  { %v94_v33 = vadd.f32 1.0, %v287_v30  ;;  %v97_v34 = vmul.f32 -0.5, %v287_v30  ;;  %v100_v44 = vand.u32 2147483647, %v287_v30 }
  0x11   :  { %v289_v36 = vpop.eup %288  ;;  %292 = vlog2.f32 %v85_v31  ;;  %v89_v38 = vadd.f32 1.0, %v88_v32  ;;  %vm457_vm1 = vcmp.lt.f32.partialorder %v91_v40, 0.0004427343 }
  0x12   :  { %v291_v37 = vpop.eup %290  ;;  %294 = vlog2.f32 %v94_v33  ;;  %v67_v39 = vadd.f32 1.0, %v289_v36  ;;  %v98_v41 = vadd.f32 1.0, %v97_v34  ;;  %v70_v42 = vmul.f32 -0.5, %v289_v36 }
  0x13   :  { %v76_v43 = vadd.f32 1.0, %v291_v37  ;;  %v79_v45 = vmul.f32 -0.5, %v291_v37  ;;  %v90_v47 = vmul.f32 %v285_v28, %v89_v38  ;;  %v73_v48 = vand.u32 2147483647, %v289_v36 }
  0x14   :  { %296 = vlog2.f32 %v67_v39  ;;  %v71_v46 = vadd.f32 1.0, %v70_v42  ;;  %v99_v53 = vmul.f32 %v287_v30, %v98_v41  ;;  %v82_v54 = vand.u32 2147483647, %v291_v37 }
  0x15   :  { %298 = vlog2.f32 %v76_v43  ;;  %v80_v49 = vadd.f32 1.0, %v79_v45  ;;  %vm101_vm2 = vcmp.lt.f32.partialorder %v100_v44, 0.0004427343  ;;  %vm466_vm3 = vcmp.lt.f32.partialorder %v73_v48, 0.0004427343 }
  0x16   :  { %v72_v60 = vmul.f32 %v289_v36, %v71_v46  ;;  %vm83_vm4 = vcmp.lt.f32.partialorder %v82_v54, 0.0004427343 }
  0x17   :  { %v293_v50 = vpop.eup %292  ;;  %v81_v2 = vmul.f32 %v291_v37, %v80_v49 }
  0x18   :  { %v295_v55 = vpop.eup %294  ;;  %v87_v57 = vmul.f32 0.6931472, %v293_v50 }
  0x19   :  { %v96_v58 = vmul.f32 0.6931472, %v295_v55 }
  0x1a   :  { %v297_v61 = vpop.eup %296  ;;  %v93_v62 = vsel %vm457_vm1, %v90_v47, %v87_v57 }
  0x1b   :  { %v299_v3 = vpop.eup %298  ;;  %v102_v5 = vsel %vm101_vm2, %v99_v53, %v96_v58  ;;  %v105_v1 = vadd.f32 %v93_v62, %v49_v51  ;;  %v69_v9 = vmul.f32 0.6931472, %v297_v61 }
  0x1c   :  { %v106_v10 = vadd.f32 %v102_v5, %v50_v56  ;;  %v78_v11 = vmul.f32 0.6931472, %v299_v3 }
  0x1d   :  { %300 = vlog2.f32 %v105_v1  ;;  %v134_v12 = vmul.f32 %v105_v1, %v421_v7  ;;  %v75_v13 = vsel %vm466_vm3, %v72_v60, %v69_v9  ;;  %v33_v7 = vld [vmem:[%s543_s1 + $0x8] sm:$0xff]  ;;  %v41_v60 = vld [vmem:[%s546_s4] sm:$0x1] }
  0x1e   :  { %302 = vlog2.f32 %v106_v10  ;;  %v135_v14 = vmul.f32 %v106_v10, %v426_v8  ;;  %v84_v15 = vsel %vm83_vm4, %v81_v2, %v78_v11  ;;  %v103_v16 = vadd.f32 %v75_v13, %v47_v59  ;;  %v207_v59 = vld [vmem:[%s542_s0] sm:$0x1] }
  0x1f   :  { %v138_v17 = vadd.f32 %v134_v12, %v34_v4  ;;  %v104_v20 = vadd.f32 %v84_v15, %v48_v63  ;;  %v108_v61 = vand.u32 2147483647, %v41_v60  ;;  %v107_v11 = vmax.f32 %v41_v60, 0.0 }
  0x20   :  { %v139_v23 = vadd.f32 %v135_v14, %v35_v6  ;;  %304 = vlog2.f32 %v103_v16  ;;  %v132_v24 = vmul.f32 %v103_v16, %v441_v21  ;;  %v167_v15 = vadd.f32 %v436_v19, %v454_v35 }
  0x21   :  { %v181_v25 = vmul.f32 %v138_v17, %v138_v17  ;;  %v205_v26 = vpack.c.bf16 %v138_v17, %v138_v17  ;;  %306 = vlog2.f32 %v104_v20  ;;  %v133_v8 = vmul.f32 %v104_v20, %v446_v22  ;;  %v46_v17 = vld [vmem:[%s548_s6] sm:$0x1] }
  0x22   :  { %v182_v27 = vmul.f32 %v139_v23, %v139_v23  ;;  %v206_v28 = vpack.c.bf16 %v139_v23, %v139_v23  ;;  %v136_v29 = vadd.f32 %v132_v24, %v32_v18  ;;  %v109_v62 = vsub.f32 0.0, %v108_v61 }
  0x23   :  { %v301_v30 = vpop.eup %300  ;;  %v186_v31 = vsel %vm142_vm0, %v181_v25, 0.0  ;;  %v217_v32 = vunpack.c.l.b16 %v205_v26  ;;  %245 = vst.msk [vmem:[%s551_s9 + $0x8] sm:$0xf] %vm242_vm5, %v205_v26  ;;  %v137_v33 = vadd.f32 %v133_v8, %v33_v7  ;;  %v168_v20 = vrot.slane %v167_v15, 4  ;;  %v40_v8 = vld [vmem:[%s545_s3] sm:$0x1] }
  0x24   :  { %v303_v34 = vpop.eup %302  ;;  %v127_v21 = vmul.f32 0.6931472, %v301_v30  ;;  %v188_v36 = vsel %vm142_vm0, %v182_v27, 0.0  ;;  %v218_v37 = vunpack.c.l.b16 %v206_v28  ;;  %246 = vst.msk [vmem:[%s551_s9 + $0xc] sm:$0xf] %vm242_vm5, %v206_v28  ;;  %v179_v22 = vmul.f32 %v136_v29, %v136_v29  ;;  %s340_s3 = smov [#allocation2]  }
  0x25   :  { %v129_v38 = vmul.f32 0.6931472, %v303_v34  ;;  %v180_v39 = vmul.f32 %v137_v33, %v137_v33  ;;  %v203_v40 = vpack.c.bf16 %v136_v29, %v136_v29  ;;  %v204_v41 = vpack.c.bf16 %v137_v33, %v137_v33  ;;  %s261_s6 = sshll.u32 %s340_s3, 4  ;;  %s262_s6 = int_to_ptr.vmem [resolvable:$true] %s261_s6 }
  0x26   :  { %v305_v42 = vpop.eup %304  ;;  %v146_v43 = vsel %vm142_vm0, %v127_v21, 0.0  ;;  %v220_v44 = vpack.c.b16 %v218_v37, %v217_v32  ;;  %v183_v45 = vsel %vm142_vm0, %v179_v22, 0.0  ;;  %v110_v63 = vmul.f32 1.442695, %v109_v62 }
  0x27   :  { %v307_v46 = vpop.eup %306  ;;  %v148_v47 = vsel %vm142_vm0, %v129_v38, 0.0  ;;  %v123_v48 = vmul.f32 0.6931472, %v305_v42  ;;  %v184_v49 = vsel %vm142_vm0, %v180_v39, 0.0  ;;  %v215_v50 = vunpack.c.l.b16 %v203_v40  ;;  %243 = vst.msk [vmem:[%s551_s9] sm:$0xf] %vm242_vm5, %v203_v40 }
  0x28   :  { %232 = vmatpush.bf16.msra.mxu0 %v220_v44  ;;  %v125_v51 = vmul.f32 0.6931472, %v307_v46  ;;  %v185_v52 = vadd.f32 %v184_v49, %v183_v45  ;;  %v216_v53 = vunpack.c.l.b16 %v204_v41  ;;  %244 = vst.msk [vmem:[%s551_s9 + $0x4] sm:$0xf] %vm242_vm5, %v204_v41  ;;  %308 = vpow2.f32 %v110_v63 }
  0x29   :  { %v143_v54 = vsel %vm142_vm0, %v123_v48, 0.0  ;;  %v169_v24 = vadd.f32 %v168_v20, %v167_v15  ;;  %v174_v33 = vmul.f32 %v46_v17, %v46_v17 }
  0x2a   :  { %v144_v55 = vsel %vm142_vm0, %v125_v51, 0.0  ;;  %v187_v56 = vadd.f32 %v186_v31, %v185_v52  ;;  %v219_v57 = vpack.c.b16 %v216_v53, %v215_v50  ;;  %v251_v50 = vld [vmem:[%s552_s10] sm:$0x1] }
  0x2b   :  { %v145_v58 = vadd.f32 %v144_v55, %v143_v54  ;;  %v170_v28 = vrot.slane %v169_v24, 2 }
  0x2c   :  { %233 = vmatpush.bf16.msra.mxu0 %v219_v57  ;;  %v189_v16 = vadd.f32 %v188_v36, %v187_v56 }
  0x2d   :  { %v147_v12 = vadd.f32 %v146_v43, %v145_v58  ;;  %v171_v29 = vadd.f32 %v170_v28, %v169_v24 }
  0x2e   :  { %v309_v0 = vpop.eup %308  ;;  %v190_v23 = vrot.slane %v189_v16, 4 }
  0x2f   :  { %282 = vmatmul.msk.bf16.vlgmr.msra.gmra.mxu0 %vm142_vm0, %v207_v59  ;;  %v112_v2 = vadd.f32 1.0, %v309_v0  ;;  %v115_v3 = vmul.f32 -0.5, %v309_v0  ;;  %v118_v9 = vand.u32 2147483647, %v309_v0  ;;  %v149_v14 = vadd.f32 %v148_v47, %v147_v12 }
  0x30   :  { %v191_v25 = vadd.f32 %v190_v23, %v189_v16  ;;  %v172_v21 = vrot.slane %v171_v29, 1 }
  0x31   :  { %310 = vlog2.f32 %v112_v2  ;;  %v116_v5 = vadd.f32 1.0, %v115_v3  ;;  %vm119_vm6 = vcmp.lt.f32.partialorder %v118_v9, 0.0004427343  ;;  %v150_v18 = vrot.slane %v149_v14, 4 }
  0x32   :  { %v192_v19 = vrot.slane %v191_v25, 2  ;;  %v173_v38 = vadd.f32 %v172_v21, %v171_v29 }
  0x33   :  { %v117_v10 = vmul.f32 %v309_v0, %v116_v5  ;;  %v151_v7 = vadd.f32 %v150_v18, %v149_v14 }
  0x34   :  { %v193_v30 = vadd.f32 %v192_v19, %v191_v25  ;;  %v175_v42 = vadd.f32 %v174_v33, %v173_v38 }
  0x35   :  { %v152_v27 = vrot.slane %v151_v7, 2 }
  0x36   :  { %v194_v36 = vrot.slane %v193_v30, 1  ;;  %v177_v45 = vmul.f32 0.5, %v175_v42 }
  0x37   :  { %v311_v1 = vpop.eup %310  ;;  %v153_v35 = vadd.f32 %v152_v27, %v151_v7 }
  0x38   :  { %v114_v4 = vmul.f32 0.6931472, %v311_v1  ;;  %v195_v39 = vadd.f32 %v194_v36, %v193_v30 }
  0x39   :  { %v154_v34 = vrot.slane %v153_v35, 1 }
  0x3a   :  { %v120_v6 = vsel %vm119_vm6, %v117_v10, %v114_v4 }
  0x3b   :  { %v121_v13 = vadd.f32 %v120_v6, %v107_v11  ;;  %v155_v22 = vadd.f32 %v154_v34, %v153_v35 }
  0x3d   :  { %312 = vlog2.f32 %v121_v13  ;;  %v140_v26 = vmul.f32 %v121_v13, %v46_v17 }
  0x3f   :  { %v141_v32 = vadd.f32 %v140_v26, %v40_v8 }
  0x41   :  { %v196_v40 = vmul.f32 %v141_v32, %v141_v32  ;;  %v247_v49 = vpack.c.bf16 %v141_v32, %v141_v32  ;;  %v209_v53 = vperm.slane %v141_v32, 0 }
  0x43   :  { %v313_v31 = vpop.eup %312  ;;  %v197_v43 = vadd.f32 %v196_v40, %v195_v39  ;;  %v252_v52 = vsel %vm250_vm9, %v247_v49, %v251_v50 }
  0x44   :  { %v131_v37 = vmul.f32 0.6931472, %v313_v31  ;;  %253 = vst [vmem:[%s552_s10] sm:$0x1] %v252_v52 }
  0x45   :  { %v198_v46 = vmul.f32 0.28991285, %v197_v43 }
  0x46   :  { %v156_v41 = vadd.f32 %v155_v22, %v131_v37 }
  0x47   :  { %v199_v48 = vsub.f32 -39.31793, %v198_v46 }
  0x48   :  { %v176_v44 = vsub.f32 -30.324972, %v156_v41 }
  0x4a   :  { %v178_v47 = vsub.f32 %v176_v44, %v177_v45 }
  0x4c   :  { %v200_v51 = vsub.f32 %v178_v47, %v199_v48 }
  0x4e   :  { %202 = vst.msk [vmem:[#allocation2] sm:$0x1] %vm201_vm7, %v200_v51 }
  0x4f   :  { %266 = dma.vmem_to_hbm [thread:$0]  %s262_s6, 16, %s264_s5, [#allocation3]  }
  0xac   :  { %v235_v54 = vpop.f32.mrf.mxu0 }
  0xad   :  { %v236_v55 = vadd.f32 %v235_v54, %v209_v53 }
  0xaf   :  { %v239_v56 = vmax.f32 %v236_v55, 0.0 }
  0xb1   :  { %v240_v57 = vpack.c.bf16 %v239_v56, %v239_v56 }
  0xb3   :  { %241 = vst.msk [vmem:[%s549_s7] sm:$0x1] %vm201_vm7, %v240_v57 }
  0xb4   :  { %v237_v58 = vpop.f32.mrf.mxu0 }
  0xb5   :  { %338 = dma.done.wait [#allocation3], 16  }
  0xb6   :  { %339 = vsyncadd [#allocation3], 4294967280 }
  0xb7   :  { %281 = vsyncpa [#allocation3], 1 }

// kernel: bnn_forward.5
= control target key start
LH: loop header
LB: loop body
LE: loop exit
PB: predicated region body
PF: predicated region fallthrough
CT: control target
= control target key end

     0   :  { %s376_s0 = inlined_call_operand.vmem [shape: bf16[2,16], index: 0, kind: input, shape index: {}]   ;;  %s377_s1 = inlined_call_operand.vmem [shape: f32[16,32], index: 1, kind: input, shape index: {}]   ;;  %s378_s2 = inlined_call_operand.vmem [shape: f32[16,32], index: 2, kind: input, shape index: {}]   ;;  %s379_s3 = inlined_call_operand.vmem [shape: f32[1,32], index: 3, kind: input, shape index: {}]   ;;  %s380_s4 = inlined_call_operand.vmem [shape: f32[1,32], index: 4, kind: input, shape index: {}]   ;;  %s381_s5 = inlined_call_operand.vmem [shape: f32[16,32], index: 5, kind: input, shape index: {}]   ;;  %s382_s6 = inlined_call_operand.vmem [shape: f32[1,32], index: 6, kind: input, shape index: {}]   ;;  %s383_s7 = inlined_call_operand.vmem [shape: bf16[2,32], index: 7, kind: output, shape index: {0}]   ;;  %s384_s8 = inlined_call_operand.hbm [shape: f32[1,32], index: 8, kind: output, shape index: {1}]   ;;  %s385_s9 = inlined_call_operand.vmem [shape: bf16[16,32], index: 9, kind: output, shape index: {2}]   ;;  %s386_s10 = inlined_call_operand.vmem [shape: bf16[1,32], index: 10, kind: output, shape index: {3}]  }
   0x1   :  { %v34_v0 = vld [vmem:[%s378_s2] sm:$0xff]  ;;  %v35_v1 = vld [vmem:[%s378_s2 + $0x8] sm:$0xff] }
   0x2   :  { %v43_v2 = vand.u32 2147483647, %v34_v0  ;;  %v44_v3 = vand.u32 2147483647, %v35_v1 }
   0x3   :  { %16 = vsyncpa [#allocation3], 0  ;;  %v38_v7 = vld [vmem:[%s381_s5] sm:$0xff]  ;;  %v39_v8 = vld [vmem:[%s381_s5 + $0x8] sm:$0xff]  ;;  %vm98_vm0 = vcmask 261120   ;;  %v41_v27 = vmax.f32 %v34_v0, 0.0 }
   0x4   :  { %v45_v4 = vsub.f32 0.0, %v43_v2  ;;  %v46_v5 = vsub.f32 0.0, %v44_v3  ;;  %v109_v10 = vmul.f32 %v38_v7, %v38_v7  ;;  %v110_v11 = vmul.f32 %v39_v8, %v39_v8  ;;  %v32_v36 = vld [vmem:[%s377_s1] sm:$0xff]  ;;  %v33_v38 = vld [vmem:[%s377_s1 + $0x8] sm:$0xff]  ;;  %s194_s13 = sshll.u32 %s384_s8, 4  ;;  %s195_s13 = int_to_ptr.hbm [resolvable:$true] %s194_s13 }
   0x5   :  { %v42_v30 = vmax.f32 %v35_v1, 0.0  ;;  %vm175_vm3 = vcmask 257024   ;;  %v145_v60 = vld [vmem:[%s376_s0] sm:$0x1]  ;;  %vm155_vm4 = vcmask 130048   ;;  %vm141_vm6 = vcmask 253952  }
   0x6   :  { %v47_v6 = vmul.f32 1.442695, %v45_v4  ;;  %v49_v9 = vmul.f32 1.442695, %v46_v5  ;;  %v111_v12 = vsel %vm98_vm0, %v109_v10, 0.0  ;;  %v112_v13 = vsel %vm98_vm0, %v110_v11, 0.0 }
   0x7   :  { %v329_v14 = vadd.f32 %v112_v13, %v111_v12  ;;  %v37_v61 = vld [vmem:[%s380_s4] sm:$0x1]  ;;  %vm180_vm7 = vsmask.f32 256 }
   0x8   :  { %215 = vpow2.f32 %v47_v6  ;;  %v72_v62 = vand.u32 2147483647, %v37_v61  ;;  %vm181_vm8 = vmand %vm141_vm6, %vm180_vm7 }
   0x9   :  { %217 = vpow2.f32 %v49_v9  ;;  %v71_v9 = vmax.f32 %v37_v61, 0.0  ;;  %v114_v11 = vrot.slane %v329_v14, 4 }
   0xa   :  { %v73_v63 = vsub.f32 0.0, %v72_v62 }
   0xc   :  { %v74_v0 = vmul.f32 1.442695, %v73_v63 }
   0xe   :  { %v216_v15 = vpop.eup %215 }
   0xf   :  { %v218_v16 = vpop.eup %217  ;;  %v51_v17 = vadd.f32 1.0, %v216_v15  ;;  %v54_v18 = vmul.f32 -0.5, %v216_v15  ;;  %v57_v22 = vand.u32 2147483647, %v216_v15 }
  0x10   :  { %v60_v19 = vadd.f32 1.0, %v218_v16  ;;  %v63_v20 = vmul.f32 -0.5, %v218_v16  ;;  %v66_v24 = vand.u32 2147483647, %v218_v16 }
  0x11   :  { %219 = vlog2.f32 %v51_v17  ;;  %v55_v21 = vadd.f32 1.0, %v54_v18  ;;  %vm58_vm1 = vcmp.lt.f32.partialorder %v57_v22, 0.0004427343  ;;  %v40_v17 = vld [vmem:[%s382_s6] sm:$0x1] }
  0x12   :  { %221 = vlog2.f32 %v60_v19  ;;  %v64_v23 = vadd.f32 1.0, %v63_v20  ;;  %vm67_vm2 = vcmp.lt.f32.partialorder %v66_v24, 0.0004427343 }
  0x13   :  { %v56_v25 = vmul.f32 %v216_v15, %v55_v21  ;;  %v115_v15 = vadd.f32 %v114_v11, %v329_v14  ;;  %v36_v21 = vld [vmem:[%s379_s3] sm:$0x1]  ;;  %s259_s3 = smov [#allocation2]  }
  0x14   :  { %v65_v28 = vmul.f32 %v218_v16, %v64_v23  ;;  %s192_s6 = sshll.u32 %s259_s3, 4  ;;  %s193_s6 = int_to_ptr.vmem [resolvable:$true] %s192_s6 }
  0x15   :  { %v116_v23 = vrot.slane %v115_v15, 2 }
  0x17   :  { %v220_v26 = vpop.eup %219 }
  0x18   :  { %v222_v29 = vpop.eup %221  ;;  %v53_v31 = vmul.f32 0.6931472, %v220_v26  ;;  %v117_v26 = vadd.f32 %v116_v23, %v115_v15 }
  0x19   :  { %v62_v32 = vmul.f32 0.6931472, %v222_v29  ;;  %v120_v29 = vmul.f32 %v40_v17, %v40_v17 }
  0x1a   :  { %v59_v33 = vsel %vm58_vm1, %v56_v25, %v53_v31  ;;  %v118_v31 = vrot.slane %v117_v26, 1 }
  0x1b   :  { %v68_v34 = vsel %vm67_vm2, %v65_v28, %v62_v32  ;;  %v69_v35 = vadd.f32 %v59_v33, %v41_v27 }
  0x1c   :  { %v70_v37 = vadd.f32 %v68_v34, %v42_v30 }
  0x1d   :  { %223 = vlog2.f32 %v69_v35  ;;  %v92_v39 = vmul.f32 %v69_v35, %v38_v7  ;;  %v119_v35 = vadd.f32 %v118_v31, %v117_v26 }
  0x1e   :  { %225 = vlog2.f32 %v70_v37  ;;  %v93_v40 = vmul.f32 %v70_v37, %v39_v8 }
  0x1f   :  { %v94_v41 = vadd.f32 %v92_v39, %v32_v36  ;;  %227 = vpow2.f32 %v74_v0  ;;  %v121_v39 = vadd.f32 %v120_v29, %v119_v35 }
  0x20   :  { %v95_v42 = vadd.f32 %v93_v40, %v33_v38 }
  0x21   :  { %v125_v43 = vmul.f32 %v94_v41, %v94_v41  ;;  %v143_v44 = vpack.c.bf16 %v94_v41, %v94_v41 }
  0x22   :  { %v126_v45 = vmul.f32 %v95_v42, %v95_v42  ;;  %v144_v46 = vpack.c.bf16 %v95_v42, %v95_v42  ;;  %v123_v42 = vmul.f32 0.5, %v121_v39 }
  0x23   :  { %v224_v47 = vpop.eup %223  ;;  %v127_v48 = vsel %vm98_vm0, %v125_v43, 0.0  ;;  %v151_v49 = vunpack.c.l.b16 %v143_v44  ;;  %176 = vst.msk [vmem:[%s385_s9] sm:$0xf] %vm175_vm3, %v143_v44 }
  0x24   :  { %v226_v50 = vpop.eup %225  ;;  %v87_v51 = vmul.f32 0.6931472, %v224_v47  ;;  %v128_v52 = vsel %vm98_vm0, %v126_v45, 0.0  ;;  %v152_v53 = vunpack.c.l.b16 %v144_v46  ;;  %177 = vst.msk [vmem:[%s385_s9 + $0x4] sm:$0xf] %vm175_vm3, %v144_v46 }
  0x25   :  { %v89_v54 = vmul.f32 0.6931472, %v226_v50  ;;  %v129_v55 = vadd.f32 %v128_v52, %v127_v48  ;;  %v228_v1 = vpop.eup %227  ;;  %v182_v47 = vld [vmem:[%s386_s10] sm:$0x1] }
  0x26   :  { %v99_v56 = vsel %vm98_vm0, %v87_v51, 0.0  ;;  %v153_v57 = vpack.c.b16 %v152_v53, %v151_v49  ;;  %v76_v2 = vadd.f32 1.0, %v228_v1  ;;  %v79_v3 = vmul.f32 -0.5, %v228_v1 }
  0x27   :  { %v100_v58 = vsel %vm98_vm0, %v89_v54, 0.0  ;;  %v82_v6 = vand.u32 2147483647, %v228_v1  ;;  %v130_v12 = vrot.slane %v129_v55, 4 }
  0x28   :  { %v101_v59 = vadd.f32 %v100_v58, %v99_v56  ;;  %166 = vmatpush.bf16.msra.mxu0 %v153_v57  ;;  %229 = vlog2.f32 %v76_v2  ;;  %v80_v4 = vadd.f32 1.0, %v79_v3 }
  0x29   :  { %vm83_vm5 = vcmp.lt.f32.partialorder %v82_v6, 0.0004427343  ;;  %v131_v16 = vadd.f32 %v130_v12, %v129_v55 }
  0x2a   :  { %v81_v8 = vmul.f32 %v228_v1, %v80_v4  ;;  %v102_v18 = vrot.slane %v101_v59, 4 }
  0x2b   :  { %213 = vmatmul.msk.bf16.vlgmr.msra.gmra.mxu0 %vm155_vm4, %v145_v60  ;;  %v132_v24 = vrot.slane %v131_v16, 2 }
  0x2c   :  { %v103_v19 = vadd.f32 %v102_v18, %v101_v59 }
  0x2d   :  { %v133_v27 = vadd.f32 %v132_v24, %v131_v16 }
  0x2e   :  { %v230_v5 = vpop.eup %229  ;;  %v104_v22 = vrot.slane %v103_v19, 2 }
  0x2f   :  { %v78_v7 = vmul.f32 0.6931472, %v230_v5  ;;  %v134_v32 = vrot.slane %v133_v27, 1 }
  0x30   :  { %v105_v25 = vadd.f32 %v104_v22, %v103_v19 }
  0x31   :  { %v84_v10 = vsel %vm83_vm5, %v81_v8, %v78_v7  ;;  %v135_v36 = vadd.f32 %v134_v32, %v133_v27 }
  0x32   :  { %v85_v13 = vadd.f32 %v84_v10, %v71_v9  ;;  %v106_v30 = vrot.slane %v105_v25, 1 }
  0x34   :  { %231 = vlog2.f32 %v85_v13  ;;  %v96_v20 = vmul.f32 %v85_v13, %v40_v17  ;;  %v107_v34 = vadd.f32 %v106_v30, %v105_v25 }
  0x36   :  { %v97_v28 = vadd.f32 %v96_v20, %v36_v21 }
  0x38   :  { %v136_v37 = vmul.f32 %v97_v28, %v97_v28  ;;  %v178_v46 = vpack.c.bf16 %v97_v28, %v97_v28  ;;  %v147_v50 = vperm.slane %v97_v28, 0 }
  0x3a   :  { %v232_v14 = vpop.eup %231  ;;  %v137_v40 = vadd.f32 %v136_v37, %v135_v36  ;;  %v183_v49 = vsel %vm181_vm8, %v178_v46, %v182_v47 }
  0x3b   :  { %v91_v33 = vmul.f32 0.6931472, %v232_v14  ;;  %184 = vst [vmem:[%s386_s10] sm:$0x1] %v183_v49 }
  0x3c   :  { %v138_v43 = vmul.f32 0.28991285, %v137_v40 }
  0x3d   :  { %v108_v38 = vadd.f32 %v107_v34, %v91_v33 }
  0x3e   :  { %v139_v45 = vsub.f32 -20.25469, %v138_v43 }
  0x3f   :  { %v122_v41 = vsub.f32 -15.621955, %v108_v38 }
  0x41   :  { %v124_v44 = vsub.f32 %v122_v41, %v123_v42 }
  0x43   :  { %v140_v48 = vsub.f32 %v124_v44, %v139_v45 }
  0x45   :  { %142 = vst.msk [vmem:[#allocation2] sm:$0x1] %vm141_vm6, %v140_v48 }
  0x46   :  { %197 = dma.vmem_to_hbm [thread:$0]  %s193_s6, 16, %s195_s13, [#allocation3]  }
  0xa8   :  { %v168_v51 = vpop.f32.mrf.mxu0 }
  0xa9   :  { %v169_v52 = vadd.f32 %v168_v51, %v147_v50 }
  0xab   :  { %v172_v53 = vmax.f32 %v169_v52, 0.0 }
  0xad   :  { %v173_v54 = vpack.c.bf16 %v172_v53, %v172_v53 }
  0xaf   :  { %174 = vst.msk [vmem:[%s383_s7] sm:$0x1] %vm141_vm6, %v173_v54 }
  0xb0   :  { %v170_v55 = vpop.f32.mrf.mxu0 }
  0xb1   :  { %257 = dma.done.wait [#allocation3], 16  }
  0xb2   :  { %258 = vsyncadd [#allocation3], 4294967280 }
  0xb3   :  { %212 = vsyncpa [#allocation3], 1 }

// kernel: bnn_forward.7
= control target key start
LH: loop header
LB: loop body
LE: loop exit
PB: predicated region body
PF: predicated region fallthrough
CT: control target
= control target key end

     0   :  { %s552_s0 = inlined_call_operand.vmem [shape: bf16[2,32], index: 0, kind: input, shape index: {}]   ;;  %s553_s1 = inlined_call_operand.vmem [shape: f32[32,8], index: 1, kind: input, shape index: {}]   ;;  %s554_s2 = inlined_call_operand.vmem [shape: f32[32,8], index: 2, kind: input, shape index: {}]   ;;  %s555_s3 = inlined_call_operand.vmem [shape: f32[1,8], index: 3, kind: input, shape index: {}]   ;;  %s556_s4 = inlined_call_operand.vmem [shape: f32[1,8], index: 4, kind: input, shape index: {}]   ;;  %s557_s5 = inlined_call_operand.vmem [shape: f32[32,8], index: 5, kind: input, shape index: {}]   ;;  %s558_s6 = inlined_call_operand.vmem [shape: f32[1,8], index: 6, kind: input, shape index: {}]   ;;  %s559_s7 = inlined_call_operand.hbm [shape: f32[2,8], index: 7, kind: output, shape index: {0}]   ;;  %s560_s8 = inlined_call_operand.vmem [shape: f32[1,8], index: 8, kind: output, shape index: {1}]   ;;  %s561_s9 = inlined_call_operand.vmem [shape: bf16[32,8], index: 9, kind: output, shape index: {2}]   ;;  %s562_s10 = inlined_call_operand.vmem [shape: bf16[1,8], index: 10, kind: output, shape index: {3}]  }
   0x1   :  { %v399_v0 = vld [vmem:[%s554_s2 + $0x10] sm:$0xff]  ;;  %v404_v1 = vld [vmem:[%s554_s2 + $0x18] sm:$0xff]  ;;  %v411_v4 = vld [vmem:[%s554_s2] sm:$0xff] }
   0x2   :  { %v53_v2 = vand.u32 2147483647, %v399_v0  ;;  %v54_v3 = vand.u32 2147483647, %v404_v1  ;;  %v416_v6 = vld [vmem:[%s554_s2 + $0x8] sm:$0xff] }
   0x3   :  { %v51_v8 = vand.u32 2147483647, %v411_v4  ;;  %v52_v10 = vand.u32 2147483647, %v416_v6 }
   0x4   :  { %v57_v5 = vsub.f32 0.0, %v53_v2  ;;  %v58_v7 = vsub.f32 0.0, %v54_v3 }
   0x6   :  { %v63_v9 = vmul.f32 1.442695, %v57_v5 }
   0x7   :  { %16 = vsyncpa [#allocation3], 0  ;;  %v65_v11 = vmul.f32 1.442695, %v58_v7  ;;  %v55_v12 = vsub.f32 0.0, %v51_v8  ;;  %v56_v13 = vsub.f32 0.0, %v52_v10 }
   0x8   :  { %284 = vpow2.f32 %v63_v9  ;;  %v423_v18 = vld [vmem:[%s557_s5 + $0x10] sm:$0xff]  ;;  %v49_v19 = vmax.f32 %v399_v0, 0.0  ;;  %v50_v20 = vmax.f32 %v404_v1, 0.0  ;;  %v430_v23 = vld [vmem:[%s557_s5 + $0x18] sm:$0xff]  ;;  %v47_v27 = vmax.f32 %v411_v4, 0.0  ;;  %v440_v30 = vld [vmem:[%s557_s5] sm:$0xff] }
   0x9   :  { %286 = vpow2.f32 %v65_v11  ;;  %v59_v14 = vmul.f32 1.442695, %v55_v12  ;;  %v61_v15 = vmul.f32 1.442695, %v56_v13  ;;  %v159_v26 = vmul.f32 %v423_v18, %v423_v18  ;;  %v448_v38 = vld [vmem:[%s557_s5 + $0x8] sm:$0xff]  ;;  %s261_s12 = sshll.u32 %s559_s7, 4  ;;  %s262_s12 = int_to_ptr.hbm [resolvable:$true] %s261_s12 }
   0xa   :  { %vm142_vm0 = vcmask 64512   ;;  %v160_v29 = vmul.f32 %v430_v23, %v430_v23  ;;  %v48_v31 = vmax.f32 %v416_v6, 0.0  ;;  %v157_v35 = vmul.f32 %v440_v30, %v440_v30  ;;  %v454_v44 = vld [vmem:[%s556_s4] sm:$0x1]  ;;  %s340_s4 = smov [#allocation2]  }
   0xb   :  { %288 = vpow2.f32 %v59_v14  ;;  %v164_v42 = vsel %vm142_vm0, %v159_v26, 0.0  ;;  %v158_v47 = vmul.f32 %v448_v38, %v448_v38  ;;  %v108_v56 = vand.u32 2147483647, %v454_v44  ;;  %v34_v14 = vld [vmem:[%s553_s1 + $0x10] sm:$0xff]  ;;  %s259_s5 = sshll.u32 %s340_s4, 4  ;;  %s260_s5 = int_to_ptr.vmem [resolvable:$true] %s259_s5 }
   0xc   :  { %290 = vpow2.f32 %v61_v15  ;;  %v161_v51 = vsel %vm142_vm0, %v157_v35, 0.0  ;;  %v166_v60 = vsel %vm142_vm0, %v160_v29, 0.0  ;;  %vm242_vm5 = vcmask 60416  }
   0xd   :  { %v162_v55 = vsel %vm142_vm0, %v158_v47, 0.0  ;;  %v109_v1 = vsub.f32 0.0, %v108_v56  ;;  %vm223_vm6 = vcmask 261120   ;;  %vm201_vm8 = vcmask 57344  }
   0xe   :  { %v285_v16 = vpop.eup %284  ;;  %v163_v61 = vadd.f32 %v162_v55, %v161_v51  ;;  %vm249_vm9 = vsmask.f32 256  ;;  %vm240_vm11 = vcmask 58368  }
   0xf   :  { %v287_v17 = vpop.eup %286  ;;  %v85_v21 = vadd.f32 1.0, %v285_v16  ;;  %v88_v22 = vmul.f32 -0.5, %v285_v16  ;;  %v91_v36 = vand.u32 2147483647, %v285_v16  ;;  %v110_v13 = vmul.f32 1.442695, %v109_v1  ;;  %vm250_vm10 = vmand %vm201_vm8, %vm249_vm9 }
  0x10   :  { %v94_v24 = vadd.f32 1.0, %v287_v17  ;;  %v97_v25 = vmul.f32 -0.5, %v287_v17  ;;  %v100_v41 = vand.u32 2147483647, %v287_v17  ;;  %v165_v8 = vadd.f32 %v164_v42, %v163_v61 }
  0x11   :  { %v289_v28 = vpop.eup %288  ;;  %292 = vlog2.f32 %v85_v21  ;;  %v89_v33 = vadd.f32 1.0, %v88_v22  ;;  %vm459_vm1 = vcmp.lt.f32.partialorder %v91_v36, 0.0004427343  ;;  %v35_v21 = vld [vmem:[%s553_s1 + $0x18] sm:$0xff] }
  0x12   :  { %v291_v32 = vpop.eup %290  ;;  %294 = vlog2.f32 %v94_v24  ;;  %v67_v34 = vadd.f32 1.0, %v289_v28  ;;  %v98_v37 = vadd.f32 1.0, %v97_v25  ;;  %v70_v39 = vmul.f32 -0.5, %v289_v28 }
  0x13   :  { %v76_v40 = vadd.f32 1.0, %v291_v32  ;;  %v79_v43 = vmul.f32 -0.5, %v291_v32  ;;  %v73_v46 = vand.u32 2147483647, %v289_v28  ;;  %v90_v48 = vmul.f32 %v285_v16, %v89_v33 }
  0x14   :  { %296 = vlog2.f32 %v67_v34  ;;  %v71_v45 = vadd.f32 1.0, %v70_v39  ;;  %v82_v50 = vand.u32 2147483647, %v291_v32  ;;  %v99_v54 = vmul.f32 %v287_v17, %v98_v37 }
  0x15   :  { %298 = vlog2.f32 %v76_v40  ;;  %v80_v49 = vadd.f32 1.0, %v79_v43  ;;  %vm465_vm2 = vcmp.lt.f32.partialorder %v100_v41, 0.0004427343  ;;  %vm470_vm3 = vcmp.lt.f32.partialorder %v73_v46, 0.0004427343 }
  0x16   :  { %v72_v63 = vmul.f32 %v289_v28, %v71_v45  ;;  %vm476_vm4 = vcmp.lt.f32.partialorder %v82_v50, 0.0004427343  ;;  %v167_v17 = vadd.f32 %v166_v60, %v165_v8  ;;  %v32_v28 = vld [vmem:[%s553_s1] sm:$0xff] }
  0x17   :  { %v293_v52 = vpop.eup %292  ;;  %v81_v5 = vmul.f32 %v291_v32, %v80_v49 }
  0x18   :  { %v295_v57 = vpop.eup %294  ;;  %v87_v58 = vmul.f32 0.6931472, %v293_v52  ;;  %v168_v4 = vrot.slane %v167_v17, 4 }
  0x19   :  { %v96_v62 = vmul.f32 0.6931472, %v295_v57 }
  0x1a   :  { %v297_v2 = vpop.eup %296  ;;  %v93_v3 = vsel %vm459_vm1, %v90_v48, %v87_v58  ;;  %v169_v42 = vadd.f32 %v168_v4, %v167_v17 }
  0x1b   :  { %v299_v9 = vpop.eup %298  ;;  %v102_v10 = vsel %vm465_vm2, %v99_v54, %v96_v62  ;;  %v105_v11 = vadd.f32 %v93_v3, %v49_v19  ;;  %v69_v12 = vmul.f32 0.6931472, %v297_v2 }
  0x1c   :  { %v106_v15 = vadd.f32 %v102_v10, %v50_v20  ;;  %v78_v16 = vmul.f32 0.6931472, %v299_v9  ;;  %v170_v1 = vrot.slane %v169_v42, 2 }
  0x1d   :  { %300 = vlog2.f32 %v105_v11  ;;  %v134_v22 = vmul.f32 %v105_v11, %v423_v18  ;;  %v75_v24 = vsel %vm470_vm3, %v72_v63, %v69_v12  ;;  %v207_v12 = vld [vmem:[%s552_s0] sm:$0x1] }
  0x1e   :  { %302 = vlog2.f32 %v106_v15  ;;  %v135_v19 = vmul.f32 %v106_v15, %v430_v23  ;;  %v84_v25 = vsel %vm476_vm4, %v81_v5, %v78_v16  ;;  %v103_v20 = vadd.f32 %v75_v24, %v47_v27  ;;  %v33_v23 = vld [vmem:[%s553_s1 + $0x8] sm:$0xff] }
  0x1f   :  { %v138_v26 = vadd.f32 %v134_v22, %v34_v14  ;;  %v104_v18 = vadd.f32 %v84_v25, %v48_v31  ;;  %304 = vpow2.f32 %v110_v13  ;;  %v171_v15 = vadd.f32 %v170_v1, %v169_v42 }
  0x20   :  { %v139_v29 = vadd.f32 %v135_v19, %v35_v21  ;;  %306 = vlog2.f32 %v103_v20  ;;  %v132_v32 = vmul.f32 %v103_v20, %v440_v30  ;;  %v107_v21 = vmax.f32 %v454_v44, 0.0  ;;  %v46_v20 = vld [vmem:[%s558_s6] sm:$0x1] }
  0x21   :  { %v181_v27 = vmul.f32 %v138_v26, %v138_v26  ;;  %v205_v33 = vpack.c.bf16 %v138_v26, %v138_v26  ;;  %308 = vlog2.f32 %v104_v18  ;;  %v133_v34 = vmul.f32 %v104_v18, %v448_v38 }
  0x22   :  { %v206_v35 = vpack.c.bf16 %v139_v29, %v139_v29  ;;  %v136_v36 = vadd.f32 %v132_v32, %v32_v28  ;;  %v182_v6 = vmul.f32 %v139_v29, %v139_v29  ;;  %v172_v28 = vrot.slane %v171_v15, 1 }
  0x23   :  { %v301_v37 = vpop.eup %300  ;;  %v217_v31 = vunpack.c.l.b16 %v205_v33  ;;  %245 = vst.msk [vmem:[%s561_s9 + $0x8] sm:$0xf] %vm242_vm5, %v205_v33  ;;  %v137_v39 = vadd.f32 %v133_v34, %v33_v23  ;;  %v186_v30 = vsel %vm142_vm0, %v181_v27, 0.0  ;;  %v40_v23 = vld [vmem:[%s555_s3] sm:$0x1]  ;;  %v174_v34 = vmul.f32 %v46_v20, %v46_v20 }
  0x24   :  { %v303_v40 = vpop.eup %302  ;;  %v218_v41 = vunpack.c.l.b16 %v206_v35  ;;  %246 = vst.msk [vmem:[%s561_s9 + $0xc] sm:$0xf] %vm242_vm5, %v206_v35  ;;  %v179_v38 = vmul.f32 %v136_v36, %v136_v36  ;;  %v127_v45 = vmul.f32 0.6931472, %v301_v37  ;;  %v203_v47 = vpack.c.bf16 %v136_v36, %v136_v36 }
  0x25   :  { %v305_v43 = vpop.eup %304  ;;  %v180_v46 = vmul.f32 %v137_v39, %v137_v39  ;;  %v204_v48 = vpack.c.bf16 %v137_v39, %v137_v39  ;;  %v129_v50 = vmul.f32 0.6931472, %v303_v40  ;;  %v188_v55 = vsel %vm142_vm0, %v182_v6, 0.0 }
  0x26   :  { %v307_v49 = vpop.eup %306  ;;  %v220_v51 = vpack.c.b16 %v218_v41, %v217_v31  ;;  %v183_v52 = vsel %vm142_vm0, %v179_v38, 0.0  ;;  %v112_v53 = vadd.f32 1.0, %v305_v43  ;;  %v215_v58 = vunpack.c.l.b16 %v203_v47  ;;  %243 = vst.msk [vmem:[%s561_s9] sm:$0xf] %vm242_vm5, %v203_v47 }
  0x27   :  { %v309_v54 = vpop.eup %308  ;;  %v123_v56 = vmul.f32 0.6931472, %v307_v49  ;;  %v184_v57 = vsel %vm142_vm0, %v180_v46, 0.0  ;;  %v216_v61 = vunpack.c.l.b16 %v204_v48  ;;  %244 = vst.msk [vmem:[%s561_s9 + $0x4] sm:$0xf] %vm242_vm5, %v204_v48  ;;  %v146_v62 = vsel %vm142_vm0, %v127_v45, 0.0 }
  0x28   :  { %233 = vmatpush.bf16.msra.mxu0 %v220_v51  ;;  %v125_v59 = vmul.f32 0.6931472, %v309_v54  ;;  %v185_v60 = vadd.f32 %v184_v57, %v183_v52  ;;  %310 = vlog2.f32 %v112_v53  ;;  %v115_v0 = vmul.f32 -0.5, %v305_v43  ;;  %v251_v52 = vld [vmem:[%s562_s10] sm:$0x1] }
  0x29   :  { %v143_v63 = vsel %vm142_vm0, %v123_v56, 0.0  ;;  %v219_v5 = vpack.c.b16 %v216_v61, %v215_v58  ;;  %v118_v7 = vand.u32 2147483647, %v305_v43  ;;  %v148_v10 = vsel %vm142_vm0, %v129_v50, 0.0 }
  0x2a   :  { %v144_v2 = vsel %vm142_vm0, %v125_v59, 0.0  ;;  %v187_v3 = vadd.f32 %v186_v30, %v185_v60  ;;  %v116_v9 = vadd.f32 1.0, %v115_v0  ;;  %v173_v33 = vadd.f32 %v172_v28, %v171_v15 }
  0x2b   :  { %v145_v8 = vadd.f32 %v144_v2, %v143_v63  ;;  %vm119_vm7 = vcmp.lt.f32.partialorder %v118_v7, 0.0004427343 }
  0x2c   :  { %v189_v11 = vadd.f32 %v188_v55, %v187_v3  ;;  %234 = vmatpush.bf16.msra.mxu0 %v219_v5  ;;  %v117_v14 = vmul.f32 %v305_v43, %v116_v9  ;;  %v175_v40 = vadd.f32 %v174_v34, %v173_v33 }
  0x2d   :  { %v147_v13 = vadd.f32 %v146_v62, %v145_v8 }
  0x2e   :  { %v311_v16 = vpop.eup %310  ;;  %v190_v17 = vrot.slane %v189_v11, 4  ;;  %v177_v46 = vmul.f32 0.5, %v175_v40 }
  0x2f   :  { %v149_v22 = vadd.f32 %v148_v10, %v147_v13  ;;  %282 = vmatmul.msk.bf16.vlgmr.msra.gmra.mxu0 %vm223_vm6, %v207_v12  ;;  %v114_v24 = vmul.f32 0.6931472, %v311_v16 }
  0x30   :  { %v191_v19 = vadd.f32 %v190_v17, %v189_v11 }
  0x31   :  { %v150_v25 = vrot.slane %v149_v22, 4  ;;  %v120_v26 = vsel %vm119_vm7, %v117_v14, %v114_v24 }
  0x32   :  { %v121_v18 = vadd.f32 %v120_v26, %v107_v21  ;;  %v192_v29 = vrot.slane %v191_v19, 2 }
  0x33   :  { %v151_v32 = vadd.f32 %v150_v25, %v149_v22 }
  0x34   :  { %312 = vlog2.f32 %v121_v18  ;;  %v140_v44 = vmul.f32 %v121_v18, %v46_v20  ;;  %v193_v4 = vadd.f32 %v192_v29, %v191_v19 }
  0x35   :  { %v152_v27 = vrot.slane %v151_v32, 2 }
  0x36   :  { %v141_v35 = vadd.f32 %v140_v44, %v40_v23  ;;  %v194_v36 = vrot.slane %v193_v4, 1 }
  0x37   :  { %v153_v37 = vadd.f32 %v152_v27, %v151_v32 }
  0x38   :  { %v195_v6 = vadd.f32 %v194_v36, %v193_v4  ;;  %v196_v31 = vmul.f32 %v141_v35, %v141_v35  ;;  %v247_v51 = vpack.c.bf16 %v141_v35, %v141_v35  ;;  %v209_v54 = vperm.slane %v141_v35, 0 }
  0x39   :  { %v154_v39 = vrot.slane %v153_v37, 1 }
  0x3a   :  { %v313_v30 = vpop.eup %312  ;;  %v197_v41 = vadd.f32 %v196_v31, %v195_v6  ;;  %v252_v53 = vsel %vm250_vm10, %v247_v51, %v251_v52 }
  0x3b   :  { %v131_v38 = vmul.f32 0.6931472, %v313_v30  ;;  %v155_v42 = vadd.f32 %v154_v39, %v153_v37  ;;  %253 = vst [vmem:[%s562_s10] sm:$0x1] %v252_v53 }
  0x3c   :  { %v198_v43 = vmul.f32 0.28991285, %v197_v41 }
  0x3d   :  { %v156_v45 = vadd.f32 %v155_v42, %v131_v38 }
  0x3e   :  { %v199_v48 = vsub.f32 -39.31793, %v198_v43 }
  0x3f   :  { %v176_v47 = vsub.f32 -30.324972, %v156_v45 }
  0x41   :  { %v178_v49 = vsub.f32 %v176_v47, %v177_v46 }
  0x43   :  { %v200_v50 = vsub.f32 %v178_v49, %v199_v48 }
  0x45   :  { %202 = vst.msk [vmem:[%s560_s8] sm:$0x1] %vm201_vm8, %v200_v50 }
  0xac   :  { %v236_v55 = vpop.f32.mrf.mxu0 }
  0xad   :  { %v237_v56 = vadd.f32 %v236_v55, %v209_v54 }
  0xaf   :  { %241 = vst.msk [vmem:[#allocation2] sm:$0x3] %vm240_vm11, %v237_v56 }
  0xb0   :  { %264 = dma.vmem_to_hbm [thread:$0]  %s260_s5, 32, %s262_s12, [#allocation3]  }
  0xb4   :  { %v238_v57 = vpop.f32.mrf.mxu0 }
  0xb5   :  { %338 = dma.done.wait [#allocation3], 32  }
  0xb6   :  { %339 = vsyncadd [#allocation3], 4294967264 }
  0xb7   :  { %281 = vsyncpa [#allocation3], 1 }

</bundles_post_ra>
